<compile_context>
chip_gen: v5e
topology: v5e:2x2
jax: 0.10.0
libtpu: 0.0.40
codegen_flags: <defaults>
</compile_context>

<pallas_src>
import jax
import jax.numpy as jnp
from jax.experimental import pallas as pl
from jax.experimental.pallas import tpu as pltpu

# --- synthetic hyper-parameters (consistent with the module's __init__) ---
N_MELS = 16
POW_SIZE = 24
INPUT_SIZE = POW_SIZE * N_MELS            # 384
HIDDEN = int(2.0 / 3.0 * INPUT_SIZE)      # 256
LATENT_DIMS = 32
BATCH = 256                               # small demo batch; tiled per chip below


def _autoencoder_kernel(x_ref,
                        w1_ref, b1_ref,    # encoder.linear1
                        w23_ref, b23_ref,  # fused encoder.linear2 @ decoder.linear1
                        w4_ref, b4_ref,    # decoder.linear2
                        out_ref):
    """Forward pass on one (TILE_B, INPUT_SIZE) batch tile.

    Weights arrive as bf16 and stay VMEM-resident across grid steps; MXU inputs
    are bf16, accumulation and the bias/ReLU/sigmoid epilogue are f32.
    """
    xb = x_ref[...].astype(jnp.bfloat16)                               # (TB, 384) bf16

    # Encoder linear1 + ReLU (ReLU output immediately narrowed to bf16).
    h = jnp.maximum(
        jnp.dot(xb, w1_ref[...], preferred_element_type=jnp.float32) + b1_ref[...],
        0.0).astype(jnp.bfloat16)                                      # (TB, 256)

    # Fused encoder.linear2 -> decoder.linear1 (no nonlinearity in between),
    # then ReLU.  Mathematically identical to the two sequential matmuls.
    d = jnp.maximum(
        jnp.dot(h, w23_ref[...], preferred_element_type=jnp.float32) + b23_ref[...],
        0.0).astype(jnp.bfloat16)                                      # (TB, 256)

    # Decoder linear2 + sigmoid.  tanh form: one EUP transcendental, stable.
    y = jnp.dot(d, w4_ref[...], preferred_element_type=jnp.float32) + b4_ref[...]
    out_ref[...] = (0.5 * (1.0 + jnp.tanh(0.5 * y))).astype(out_ref.dtype)


def _pick_tile_b(batch):
    """Largest batch tile that divides B exactly (no padding copy).

    - v5e / v6e (single TensorCore): one big step minimizes the ~0.35 us
      per-grid-step overhead, so the whole batch is one tile for small B.
    - v7x (2 TCs): an even grid lets "parallel" shard the batch across cores,
      so B >= 256 is split into two (8-sublane aligned) tiles.
    """
    if batch >= 256 and batch % 2 == 0 and (batch // 2) % 8 == 0:
        return batch // 2
    return batch


@jax.jit
def autoencoder_forward(x, params):
    """x: (B, INPUT_SIZE) float32. params: dict of bf16 weights / f32 biases."""
    w1, b1 = params["w1"], params["b1"]
    w2, b2 = params["w2"], params["b2"]
    w3, b3 = params["w3"], params["b3"]
    w4, b4 = params["w4"], params["b4"]

    # Fuse the two latent-dim linears: compose in f32, round to bf16 once.
    w2f = w2.astype(jnp.float32)
    w3f = w3.astype(jnp.float32)
    w23 = jnp.dot(w2f, w3f).astype(jnp.bfloat16)     # (HIDDEN, HIDDEN)
    b23 = jnp.dot(b2, w3f) + b3                      # (1, HIDDEN) f32

    B, D = x.shape
    tile_b = _pick_tile_b(B)
    n_tiles = B // tile_b

    def resident_spec(shape):
        # Constant block index: DMA'd once, stays resident in VMEM across steps.
        return pl.BlockSpec(shape, lambda i: tuple(0 for _ in shape))

    return pl.pallas_call(
        _autoencoder_kernel,
        out_shape=jax.ShapeDtypeStruct((B, D), jnp.float32),
        grid=(n_tiles,),
        in_specs=[
            pl.BlockSpec((tile_b, D), lambda i: (i, 0)),   # x: batch-tiled
            resident_spec(w1.shape), resident_spec(b1.shape),
            resident_spec(w23.shape), resident_spec(b23.shape),
            resident_spec(w4.shape), resident_spec(b4.shape),
        ],
        out_specs=pl.BlockSpec((tile_b, D), lambda i: (i, 0)),
        compiler_params=pltpu.CompilerParams(
            dimension_semantics=("parallel",),             # shard batch across TCs
        ),
    )(x, w1, b1, w23, b23, w4, b4)


def init_params(key):
    """Init matching nn.Linear shapes (weight pre-transposed to (in, out)).

    Weights are stored in bf16 (halves HBM traffic, feeds the bf16 MXU);
    biases stay f32 since they add into the f32 accumulator.
    """
    def linear(key, fan_in, fan_out):
        kw, kb = jax.random.split(key)
        bound = 1.0 / jnp.sqrt(fan_in)
        w = jax.random.uniform(kw, (fan_in, fan_out), jnp.float32, -bound, bound)
        b = jax.random.uniform(kb, (1, fan_out), jnp.float32, -bound, bound)
        return w.astype(jnp.bfloat16), b

    k1, k2, k3, k4 = jax.random.split(key, 4)
    w1, b1 = linear(k1, INPUT_SIZE, HIDDEN)        # encoder.linear1
    w2, b2 = linear(k2, HIDDEN, LATENT_DIMS)       # encoder.linear2
    w3, b3 = linear(k3, LATENT_DIMS, HIDDEN)       # decoder.linear1
    w4, b4 = linear(k4, HIDDEN, INPUT_SIZE)        # decoder.linear2
    return dict(w1=w1, b1=b1, w2=w2, b2=b2, w3=w3, b3=b3, w4=w4, b4=b4)


def reference_forward(x, p):
    """Pure-JAX f32 reference with the ORIGINAL (unfused) layer structure."""
    w1 = p["w1"].astype(jnp.float32)
    w2 = p["w2"].astype(jnp.float32)
    w3 = p["w3"].astype(jnp.float32)
    w4 = p["w4"].astype(jnp.float32)
    h = jax.nn.relu(jnp.dot(x, w1) + p["b1"])
    z = jnp.dot(h, w2) + p["b2"]
    d = jax.nn.relu(jnp.dot(z, w3) + p["b3"])
    return jax.nn.sigmoid(jnp.dot(d, w4) + p["b4"])


if __name__ == "__main__":
    key = jax.random.PRNGKey(0)
    kx, kp = jax.random.split(key)
    x = jax.random.normal(kx, (BATCH, INPUT_SIZE), jnp.float32)
    params = init_params(kp)

    out = jax.block_until_ready(autoencoder_forward(x, params))

    ref = reference_forward(x, params)
    assert out.shape == (BATCH, INPUT_SIZE)
    # Tolerance covers bf16 MXU inputs and the one-shot bf16 rounding of the
    # fused W2@W3; sigmoid outputs are in [0, 1] so 1e-2 absolute is ample
    # (observed error is a few 1e-3).
    assert jnp.allclose(out, ref, atol=1e-2, rtol=0.0), "mismatch vs reference"

    print("KERNEL_OK")
</pallas_src>

<mosaic_0001>
module attributes {stable_mosaic.version = 11 : i64} {
  func.func @_autoencoder_kernel(%arg0: i32, %arg1: memref<128x384xf32, #tpu.memory_space<vmem>>, %arg2: memref<384x256xbf16, #tpu.memory_space<vmem>>, %arg3: memref<1x256xf32, #tpu.memory_space<vmem>>, %arg4: memref<256x256xbf16, #tpu.memory_space<vmem>>, %arg5: memref<1x256xf32, #tpu.memory_space<vmem>>, %arg6: memref<256x384xbf16, #tpu.memory_space<vmem>>, %arg7: memref<1x384xf32, #tpu.memory_space<vmem>>, %arg8: memref<128x384xf32, #tpu.memory_space<vmem>>) attributes {dimension_semantics = [#tpu.dimension_semantics<parallel>], iteration_bounds = array<i64: 2>, scalar_prefetch = 0 : i64, scratch_operands = 0 : i64, tpu.core_type = #tpu.core_type<tc>, window_params = [{transform_indices = @transform_0, window_bounds = array<i64: 128, 384>}, {pipeline_mode = #tpu.pipeline_mode<synchronous>, transform_indices = @transform_1, window_bounds = array<i64: 384, 256>}, {pipeline_mode = #tpu.pipeline_mode<synchronous>, transform_indices = @transform_2, window_bounds = array<i64: 1, 256>}, {pipeline_mode = #tpu.pipeline_mode<synchronous>, transform_indices = @transform_3, window_bounds = array<i64: 256, 256>}, {pipeline_mode = #tpu.pipeline_mode<synchronous>, transform_indices = @transform_4, window_bounds = array<i64: 1, 256>}, {pipeline_mode = #tpu.pipeline_mode<synchronous>, transform_indices = @transform_5, window_bounds = array<i64: 256, 384>}, {pipeline_mode = #tpu.pipeline_mode<synchronous>, transform_indices = @transform_6, window_bounds = array<i64: 1, 384>}, {transform_indices = @transform_7, window_bounds = array<i64: 128, 384>}]} {
    %c0 = arith.constant 0 : index
    %c0_0 = arith.constant 0 : index
    %0 = vector.load %arg1[%c0, %c0_0] : memref<128x384xf32, #tpu.memory_space<vmem>>, vector<128x384xf32>
    %1 = arith.truncf %0 : vector<128x384xf32> to vector<128x384xbf16>
    %c0_1 = arith.constant 0 : index
    %c0_2 = arith.constant 0 : index
    %2 = vector.load %arg2[%c0_1, %c0_2] : memref<384x256xbf16, #tpu.memory_space<vmem>>, vector<384x256xbf16>
    %cst = arith.constant dense<0.000000e+00> : vector<128x256xf32>
    %3 = tpu.matmul %1, %2, %cst {dimension_numbers = #tpu.dot_dimension_numbers<[1], [0], [0], [1], [0, 0, 1, 1], [], []>} : vector<128x384xbf16>, vector<384x256xbf16>, vector<128x256xf32> -> vector<128x256xf32>
    %c0_3 = arith.constant 0 : index
    %c0_4 = arith.constant 0 : index
    %4 = vector.load %arg3[%c0_3, %c0_4] : memref<1x256xf32, #tpu.memory_space<vmem>>, vector<1x256xf32>
    %5 = vector.broadcast %4 : vector<1x256xf32> to vector<128x256xf32>
    %6 = arith.addf %3, %5 : vector<128x256xf32>
    %cst_5 = arith.constant 0.000000e+00 : f32
    %7 = vector.broadcast %cst_5 : f32 to vector<128x256xf32>
    %8 = arith.maximumf %6, %7 : vector<128x256xf32>
    %9 = arith.truncf %8 : vector<128x256xf32> to vector<128x256xbf16>
    %c0_6 = arith.constant 0 : index
    %c0_7 = arith.constant 0 : index
    %10 = vector.load %arg4[%c0_6, %c0_7] : memref<256x256xbf16, #tpu.memory_space<vmem>>, vector<256x256xbf16>
    %cst_8 = arith.constant dense<0.000000e+00> : vector<128x256xf32>
    %11 = tpu.matmul %9, %10, %cst_8 {dimension_numbers = #tpu.dot_dimension_numbers<[1], [0], [0], [1], [0, 0, 1, 1], [], []>} : vector<128x256xbf16>, vector<256x256xbf16>, vector<128x256xf32> -> vector<128x256xf32>
    %c0_9 = arith.constant 0 : index
    %c0_10 = arith.constant 0 : index
    %12 = vector.load %arg5[%c0_9, %c0_10] : memref<1x256xf32, #tpu.memory_space<vmem>>, vector<1x256xf32>
    %13 = vector.broadcast %12 : vector<1x256xf32> to vector<128x256xf32>
    %14 = arith.addf %11, %13 : vector<128x256xf32>
    %cst_11 = arith.constant 0.000000e+00 : f32
    %15 = vector.broadcast %cst_11 : f32 to vector<128x256xf32>
    %16 = arith.maximumf %14, %15 : vector<128x256xf32>
    %17 = arith.truncf %16 : vector<128x256xf32> to vector<128x256xbf16>
    %c0_12 = arith.constant 0 : index
    %c0_13 = arith.constant 0 : index
    %18 = vector.load %arg6[%c0_12, %c0_13] : memref<256x384xbf16, #tpu.memory_space<vmem>>, vector<256x384xbf16>
    %cst_14 = arith.constant dense<0.000000e+00> : vector<128x384xf32>
    %19 = tpu.matmul %17, %18, %cst_14 {dimension_numbers = #tpu.dot_dimension_numbers<[1], [0], [0], [1], [0, 0, 1, 1], [], []>} : vector<128x256xbf16>, vector<256x384xbf16>, vector<128x384xf32> -> vector<128x384xf32>
    %c0_15 = arith.constant 0 : index
    %c0_16 = arith.constant 0 : index
    %20 = vector.load %arg7[%c0_15, %c0_16] : memref<1x384xf32, #tpu.memory_space<vmem>>, vector<1x384xf32>
    %21 = vector.broadcast %20 : vector<1x384xf32> to vector<128x384xf32>
    %22 = arith.addf %19, %21 : vector<128x384xf32>
    %cst_17 = arith.constant 5.000000e-01 : f32
    %23 = vector.broadcast %cst_17 : f32 to vector<128x384xf32>
    %24 = arith.mulf %23, %22 : vector<128x384xf32>
    %25 = math.tanh %24 : vector<128x384xf32>
    %cst_18 = arith.constant 1.000000e+00 : f32
    %26 = vector.broadcast %cst_18 : f32 to vector<128x384xf32>
    %27 = arith.addf %26, %25 : vector<128x384xf32>
    %cst_19 = arith.constant 5.000000e-01 : f32
    %28 = vector.broadcast %cst_19 : f32 to vector<128x384xf32>
    %29 = arith.mulf %28, %27 : vector<128x384xf32>
    %c0_20 = arith.constant 0 : index
    %c0_21 = arith.constant 0 : index
    %30 = vector.load %arg8[%c0_20, %c0_21] : memref<128x384xf32, #tpu.memory_space<vmem>>, vector<128x384xf32>
    tpu.vector_store %arg8[%c0_20, %c0_21], %29 {strides = array<i32>} : memref<128x384xf32, #tpu.memory_space<vmem>>, vector<128x384xf32>,
    return
  }
  func.func @transform_0(%arg0: i32) -> (i32, i32) {
    %c0_i32 = arith.constant 0 : i32
    %c0_i32_0 = arith.constant 0 : i32
    return %arg0, %c0_i32 : i32, i32
  }
  func.func @transform_1(%arg0: i32) -> (i32, i32) {
    %c0_i32 = arith.constant 0 : i32
    %c0_i32_0 = arith.constant 0 : i32
    %c0_i32_1 = arith.constant 0 : i32
    return %c0_i32, %c0_i32_0 : i32, i32
  }
  func.func @transform_2(%arg0: i32) -> (i32, i32) {
    %c0_i32 = arith.constant 0 : i32
    %c0_i32_0 = arith.constant 0 : i32
    %c0_i32_1 = arith.constant 0 : i32
    return %c0_i32, %c0_i32_0 : i32, i32
  }
  func.func @transform_3(%arg0: i32) -> (i32, i32) {
    %c0_i32 = arith.constant 0 : i32
    %c0_i32_0 = arith.constant 0 : i32
    %c0_i32_1 = arith.constant 0 : i32
    return %c0_i32, %c0_i32_0 : i32, i32
  }
  func.func @transform_4(%arg0: i32) -> (i32, i32) {
    %c0_i32 = arith.constant 0 : i32
    %c0_i32_0 = arith.constant 0 : i32
    %c0_i32_1 = arith.constant 0 : i32
    return %c0_i32, %c0_i32_0 : i32, i32
  }
  func.func @transform_5(%arg0: i32) -> (i32, i32) {
    %c0_i32 = arith.constant 0 : i32
    %c0_i32_0 = arith.constant 0 : i32
    %c0_i32_1 = arith.constant 0 : i32
    return %c0_i32, %c0_i32_0 : i32, i32
  }
  func.func @transform_6(%arg0: i32) -> (i32, i32) {
    %c0_i32 = arith.constant 0 : i32
    %c0_i32_0 = arith.constant 0 : i32
    %c0_i32_1 = arith.constant 0 : i32
    return %c0_i32, %c0_i32_0 : i32, i32
  }
  func.func @transform_7(%arg0: i32) -> (i32, i32) {
    %c0_i32 = arith.constant 0 : i32
    %c0_i32_0 = arith.constant 0 : i32
    return %arg0, %c0_i32 : i32, i32
  }
}

</mosaic_0001>

<bundles_post_ra>
// kernel: autoencoder_forward.1
= control target key start
LH: loop header
LB: loop body
LE: loop exit
PB: predicated region body
PF: predicated region fallthrough
CT: control target
= control target key end

     0   :  { %s4295_s0 = inlined_call_operand.hbm [shape: f32[256,384], index: 0, kind: input, shape index: {}]   ;;  %s4296_s1 = inlined_call_operand.hbm [shape: bf16[384,256], index: 1, kind: input, shape index: {}]   ;;  %s4297_s2 = inlined_call_operand.vmem [shape: f32[1,256], index: 2, kind: input, shape index: {}]   ;;  %s4298_s3 = inlined_call_operand.vmem [shape: bf16[256,256], index: 3, kind: input, shape index: {}]   ;;  %s4299_s4 = inlined_call_operand.vmem [shape: f32[1,256], index: 4, kind: input, shape index: {}]   ;;  %s4300_s5 = inlined_call_operand.hbm [shape: bf16[256,384], index: 5, kind: input, shape index: {}]   ;;  %s4301_s6 = inlined_call_operand.vmem [shape: f32[1,384], index: 6, kind: input, shape index: {}]   ;;  %s4302_s7 = inlined_call_operand.hbm [shape: f32[256,384], index: 7, kind: output, shape index: {}]  }
   0x1   :  { %4303 = sst [smem:[#allocation13_spill]] %s4296_s1 }
   0x2   :  { %4304 = sst [smem:[#allocation14_spill]] %s4300_s5 }
   0x3   :  { %12 = vsyncpa [#allocation3], 0 }
   0x4   :  { %14 = vsyncpa [#allocation3 + $0x1], 0 }
   0x5   :  { %15 = vsyncpa [#allocation6], 0 }
   0x6   :  { %16 = vsyncpa [#allocation4], 0 }
   0x7   :  { %18 = vsyncpa [#allocation4 + $0x1], 0  ;;  %s3499_s24 = smov 0   ;;  %s3501_s25 = smov 0  }
   0x8   :  { %s3503_s26 = smov 0   ;;  %s3505_s27 = smov 0  }
   0x9 LB: > { %s3520_s28 = sadd.s32 4294967295, %s3447_s27   ;;  %s2456_s29 = sadd.s32 4294967294, %s3447_s27   ;;  %s3447_s27 = sphi %s3505_s27, %s4318_s27   ;;  %s3443_s26 = sphi %s3503_s26, %s4317_s26   ;;  %s3439_s25 = sphi %s3501_s25, %s4316_s25   ;;  %s3435_s24 = sphi %s3499_s24, %s4315_s24  }
   0xa   : > { %p44_p0 = scmp.ne.s32.totalorder %s3439_s25, %s3435_s24  ;;  %p45_p1 = scmp.eq.s32.totalorder %s3520_s28, 0 }
   0xb   : > { %p194_p2 = scmp.eq.s32.totalorder %s3520_s28, 1  ;;  %p200_p3 = scmp.eq.s32.totalorder %s2456_s29, 1 }
   0xc   : > { %p3529_p4 = por %p45_p1, %p44_p0  ;;  %p2457_p5 = scmp.ge.s32.totalorder %s3447_s27, 1 }
   0xd   : > { %p3534_p6 = por %p200_p3, %p44_p0  ;;  %p207_p7 = scmp.lt.s32.totalorder %s3447_s27, 3 }
   0xe   : > { %s4307_s1 = sld [smem:[#allocation13_spill]]  ;;  %s3449_s13 = smov [#allocation5]  }
   0xf   : > { %p3542_p8 = pnand %p2457_p5, %p207_p7  ;;  %s220_s14 = sshll.u32 %s3449_s13, 4  ;;  %s221_s14 = int_to_ptr.vmem [resolvable:$true] %s220_s14 }
  0x10   : > { %s4309_s5 = sld [smem:[#allocation14_spill]]  ;;  %s3450_s18 = smov 128  }
  0x11   : > { %p3128_p9 = pneg %p3542_p8  ;;  %s3451_s19 = smov 8  }
  0x12   : > { %s3452_s20 = smov [#allocation7]   ;;  %s3453_s22 = smov 192  }
  0x13   : > { %p3129_p10 = pnand %p3128_p9, %p45_p1  ;;  %s243_s21 = sshll.u32 %s3452_s20, 4  ;;  %s244_s21 = int_to_ptr.vmem [resolvable:$true] %s243_s21 }
  0x14   : > { %s218_s11 = sshll.u32 %s4307_s1, 4  ;;  %s3454_s23 = smov 12   ;;  %s219_s11 = int_to_ptr.hbm [resolvable:$true] %s218_s11 }
  0x15   : > { %3131 = dma.hbm_to_vmem [thread:$0]  (!%p3129_p10), %s219_s11, 6144, %s221_s14, [#allocation6], %s3450_s18, %s3450_s18, %s3451_s19  }
  0x16   : > { %s241_s17 = sshll.u32 %s4309_s5, 4  ;;  %s3555_s29 = sadd.s32 1, %s3447_s27   ;;  %s242_s17 = int_to_ptr.hbm [resolvable:$true] %s241_s17 }
  0x17   : > { %3134 = dma.hbm_to_vmem [thread:$0]  (!%p3129_p10), %s242_s17, 6144, %s244_s21, [#allocation6], %s3453_s22, %s3453_s22, %s3454_s23  }
  0x18   : > { %s28_s9 = ssub.s32 %s3447_s27, %s3555_s29  ;;  %s31_s10 = sadd.s32 1, %s3443_s26 }
  0x19   : > { %p29_p12 = scmp.eq.s32.totalorder %s28_s9, 0  ;;  %p38_p13 = scmp.ne.s32.totalorder %s3443_s26, %s3439_s25 }
  0x1a   : > { %p39_p0 = scmp.eq.s32.totalorder %s3447_s27, 0  ;;  %p3145_p7 = scmp.lt.s32.totalorder %s3447_s27, 2 }
  0x1b   : > { %s3564_s13 = scalar_select %p29_p12, %s3443_s26, %s31_s10  }
  0x1c   : > { %p40_p3 = por %p39_p0, %p38_p13  ;;  %p3568_p5 = por %p194_p2, %p38_p13 }
  0x1d   : > { %4310 = sst [smem:[#allocation12_spill]] %s3564_s13  ;;  %s260_s14 = sand.u32 1, %s3443_s26  }
  0x1e   : > { %s3112_s15 = smul.u32 384, %s260_s14  ;;  %p3575_p9 = pnand %p3145_p7, %p40_p3 }
  0x1f   : > { %s3113_s16 = smul.u32 384, %s3447_s27  ;;  %s261_s9 = scalar_lea.sflag [#allocation3], %s260_s14 }
  0x20   : > { %s264_s21 = scalar_lea.vmem [#allocation2], %s3112_s15  ;;  %p3351_p10 = pneg %p3575_p9 }
  0x21   : > { %s270_s20 = scalar_lea.hbm %s4295_s0, %s3113_s16  ;;  %s273_s22 = sshll.u32 %s264_s21, 4  ;;  %s274_s22 = int_to_ptr.vmem [resolvable:$true] %s273_s22 }
  0x22   : > { %s271_s23 = sshll.u32 %s270_s20, 4  ;;  %s3354_s18 = scalar_lea.hbm %s4295_s0, 768  ;;  %s272_s23 = int_to_ptr.hbm [resolvable:$true] %s271_s23 }
  0x23   : > { %s3347_s10 = sshra.s32 %s272_s23, 4  ;;  %s3348_s10 = int_to_ptr.hbm [resolvable:$true] %s3347_s10 }
  0x24   : > { %s3349_s1 = scalar_lea.hbm %s3348_s10, 384  ;;  %p3355_p0 = scmp.lt.s32.totalorder %s3348_s10, %s4295_s0 }
  0x25   : > { %p3350_p2 = scmp.ne.s32.totalorder %s3348_s10, %s3349_s1  ;;  %p3356_p3 = scmp.lt.s32.totalorder %s3354_s18, %s3349_s1 }
  0x27   : > { %p3352_p12 = pnand %p3351_p10, %p3350_p2  ;;  %p3357_p7 = por %p3356_p3, %p3355_p0 }
  0x29   : > { %p3353_p13 = pneg %p3352_p12 }
  0x2b   : > { %p3358_p11 = pnand %p3357_p7, %p3353_p13 }
  0x2d   : > { %3361 = shalt.err (!%p3358_p11)
}
  0x2e   : > { %s3455_s14 = smov 384   ;;  %s3456_s15 = smov 24  }
  0x2f   : > { %3138 = dma.hbm_to_vmem [thread:$0]  (!%p3575_p9), %s272_s23, 6144, %s274_s22, %s261_s9, %s3455_s14, %s3455_s14, %s3456_s15  }
  0x30   : > { %285 = sbr.rel (%p3542_p8) target bundleno = 907 (0x38b), region = 48  ;;  %s3595_s5 = sand.u32 (!%p3542_p8), 1, %s3439_s25  }
  0x31   : > { %s3114_s13 = smul.u32 (!%p3542_p8), 384, %s3595_s5  ;;  %s288_s1 = scalar_lea.sflag (!%p3542_p8), [#allocation3], %s3595_s5 }
  0x33   : > { %s3601_s20 = scalar_lea.vmem (!%p3542_p8), [#allocation2], %s3114_s13 }
  0x35   : > { %3422 = dma.done.wait (%p3529_p4), %s288_s1, 6144  }
  0x36   : > { %3424 = vsyncadd (%p3529_p4), %s288_s1, 4294961152 }
  0x37   : > { %3426 = dma.done.wait (%p45_p1), [#allocation6], 12288  }
  0x38   : > { %3428 = vsyncadd (%p45_p1), [#allocation6], 4294955008  ;;  %v2525_v0 = vld [vmem:[#allocation5 + $0x70] sm:$0xf]  ;;  %v2999_v1 = vld [vmem:[#allocation5 + $0x74] sm:$0xf0] }
  0x39   : > { %v2589_v2 = vld [vmem:[#allocation5 + $0xf0] sm:$0xf]  ;;  %v2526_v3 = vor.u32 %v2999_v1, %v2525_v0  ;;  %v3015_v4 = vld [vmem:[#allocation5 + $0xf4] sm:$0xf0]  ;;  %v2517_v9 = vld [vmem:[#allocation5 + $0x60] sm:$0xf] }
  0x3a   : > { %v2653_v5 = vld [vmem:[#allocation5 + $0x170] sm:$0xf]  ;;  %v3031_v6 = vld [vmem:[#allocation5 + $0x174] sm:$0xf0]  ;;  %v2590_v7 = vor.u32 %v3015_v4, %v2589_v2  ;;  %v2997_v10 = vld [vmem:[#allocation5 + $0x64] sm:$0xf0] }
  0x3b   : > { %v2654_v8 = vor.u32 %v3031_v6, %v2653_v5  ;;  %v2581_v11 = vld [vmem:[#allocation5 + $0xe0] sm:$0xf]  ;;  %701 = vmatpush.bf16.msra.mxu0 %v2526_v3  ;;  %v2518_v12 = vor.u32 %v2997_v10, %v2517_v9  ;;  %v3013_v13 = vld [vmem:[#allocation5 + $0xe4] sm:$0xf0]  ;;  %v2509_v18 = vld [vmem:[#allocation5 + $0x50] sm:$0xf] }
  0x3c   : > { %v2645_v14 = vld [vmem:[#allocation5 + $0x160] sm:$0xf]  ;;  %v3029_v15 = vld [vmem:[#allocation5 + $0x164] sm:$0xf0]  ;;  %750 = vmatpush.bf16.msra.mxu1 %v2590_v7  ;;  %v2582_v16 = vor.u32 %v3013_v13, %v2581_v11  ;;  %v2995_v19 = vld [vmem:[#allocation5 + $0x54] sm:$0xf0] }
  0x3d   : > { %799 = vmatpush.bf16.msra.mxu2 %v2654_v8  ;;  %v2646_v17 = vor.u32 %v3029_v15, %v2645_v14  ;;  %v2573_v20 = vld [vmem:[#allocation5 + $0xd0] sm:$0xf]  ;;  %v3011_v21 = vld [vmem:[#allocation5 + $0xd4] sm:$0xf0]  ;;  %v2510_v24 = vor.u32 %v2995_v19, %v2509_v18  ;;  %v2501_v27 = vld [vmem:[#allocation5 + $0x40] sm:$0xf] }
  0x3e   : > { %v2637_v22 = vld [vmem:[#allocation5 + $0x150] sm:$0xf]  ;;  %v3027_v23 = vld [vmem:[#allocation5 + $0x154] sm:$0xf0]  ;;  %v2574_v25 = vor.u32 %v3011_v21, %v2573_v20  ;;  %v2993_v28 = vld [vmem:[#allocation5 + $0x44] sm:$0xf0] }
  0x3f   : > { %702 = vmatpush.bf16.msra.mxu0 %v2518_v12  ;;  %v2638_v26 = vor.u32 %v3027_v23, %v2637_v22  ;;  %v2565_v29 = vld [vmem:[#allocation5 + $0xc0] sm:$0xf]  ;;  %v3009_v30 = vld [vmem:[#allocation5 + $0xc4] sm:$0xf0]  ;;  %v2502_v33 = vor.u32 %v2993_v28, %v2501_v27  ;;  %v2493_v36 = vld [vmem:[#allocation5 + $0x30] sm:$0xf] }
  0x40   : > { %751 = vmatpush.bf16.msra.mxu1 %v2582_v16  ;;  %v2629_v31 = vld [vmem:[#allocation5 + $0x140] sm:$0xf]  ;;  %v3025_v32 = vld [vmem:[#allocation5 + $0x144] sm:$0xf0]  ;;  %v2566_v34 = vor.u32 %v3009_v30, %v2565_v29  ;;  %v2991_v37 = vld [vmem:[#allocation5 + $0x34] sm:$0xf0] }
  0x41   : > { %800 = vmatpush.bf16.msra.mxu2 %v2646_v17  ;;  %v2630_v35 = vor.u32 %v3025_v32, %v2629_v31  ;;  %v2557_v38 = vld [vmem:[#allocation5 + $0xb0] sm:$0xf]  ;;  %v3007_v39 = vld [vmem:[#allocation5 + $0xb4] sm:$0xf0]  ;;  %v2494_v42 = vor.u32 %v2991_v37, %v2493_v36  ;;  %v2485_v45 = vld [vmem:[#allocation5 + $0x20] sm:$0xf] }
  0x42   : > { %v2621_v40 = vld [vmem:[#allocation5 + $0x130] sm:$0xf]  ;;  %v3023_v41 = vld [vmem:[#allocation5 + $0x134] sm:$0xf0]  ;;  %v2558_v43 = vor.u32 %v3007_v39, %v2557_v38  ;;  %v2989_v46 = vld [vmem:[#allocation5 + $0x24] sm:$0xf0] }
  0x43   : > { %703 = vmatpush.bf16.msra.mxu0 %v2510_v24  ;;  %v2622_v44 = vor.u32 %v3023_v41, %v2621_v40  ;;  %v2549_v47 = vld [vmem:[#allocation5 + $0xa0] sm:$0xf]  ;;  %v3005_v48 = vld [vmem:[#allocation5 + $0xa4] sm:$0xf0]  ;;  %v2486_v51 = vor.u32 %v2989_v46, %v2485_v45  ;;  %v2477_v54 = vld [vmem:[#allocation5 + $0x10] sm:$0xf] }
  0x44   : > { %752 = vmatpush.bf16.msra.mxu1 %v2574_v25  ;;  %v2613_v49 = vld [vmem:[#allocation5 + $0x120] sm:$0xf]  ;;  %v3021_v50 = vld [vmem:[#allocation5 + $0x124] sm:$0xf0]  ;;  %v2550_v52 = vor.u32 %v3005_v48, %v2549_v47  ;;  %v2987_v55 = vld [vmem:[#allocation5 + $0x14] sm:$0xf0] }
  0x45   : > { %801 = vmatpush.bf16.msra.mxu2 %v2638_v26  ;;  %v2614_v53 = vor.u32 %v3021_v50, %v2613_v49  ;;  %v2541_v56 = vld [vmem:[#allocation5 + $0x90] sm:$0xf]  ;;  %v3003_v57 = vld [vmem:[#allocation5 + $0x94] sm:$0xf0]  ;;  %v2478_v60 = vor.u32 %v2987_v55, %v2477_v54  ;;  %v2469_v61 = vld [vmem:[#allocation5] sm:$0xf] }
  0x46   : > { %v2605_v58 = vld [vmem:[#allocation5 + $0x110] sm:$0xf]  ;;  %v3019_v59 = vld [vmem:[#allocation5 + $0x114] sm:$0xf0]  ;;  %v2542_v62 = vor.u32 %v3003_v57, %v2541_v56  ;;  %v2985_v0 = vld [vmem:[#allocation5 + $0x4] sm:$0xf0] }
  0x47   : > { %704 = vmatpush.bf16.msra.mxu0 %v2502_v33  ;;  %v2606_v63 = vor.u32 %v3019_v59, %v2605_v58  ;;  %v2533_v1 = vld [vmem:[#allocation5 + $0x80] sm:$0xf]  ;;  %v3001_v2 = vld [vmem:[#allocation5 + $0x84] sm:$0xf0]  ;;  %v3014_v5 = vld [vmem:[#allocation5 + $0xf4] sm:$0xf]  ;;  %v2470_v9 = vor.u32 %v2985_v0, %v2469_v61 }
  0x48   : > { %753 = vmatpush.bf16.msra.mxu1 %v2566_v34  ;;  %v2597_v3 = vld [vmem:[#allocation5 + $0x100] sm:$0xf]  ;;  %v3017_v4 = vld [vmem:[#allocation5 + $0x104] sm:$0xf0]  ;;  %v2591_v6 = vld [vmem:[#allocation5 + $0xf8] sm:$0xf0]  ;;  %v2534_v13 = vor.u32 %v3001_v2, %v2533_v1 }
  0x49   : > { %802 = vmatpush.bf16.msra.mxu2 %v2630_v35  ;;  %v3030_v7 = vld [vmem:[#allocation5 + $0x174] sm:$0xf]  ;;  %v2655_v8 = vld [vmem:[#allocation5 + $0x178] sm:$0xf0]  ;;  %v335_v10 = vld [vmem:[%s3601_s20] sm:$0xff]  ;;  %v2598_v14 = vor.u32 %v3017_v4, %v2597_v3  ;;  %v2594_v18 = vor.u32 %v3014_v5, %v2591_v6  ;;  %s4152_s12 = scalar_lea.vmem [#allocation8], %s3114_s13 }
  0x4a   : > { %v338_v11 = vld [vmem:[%s3601_s20 + $0x18] sm:$0xff]  ;;  %v336_v12 = vld [vmem:[%s3601_s20 + $0x8] sm:$0xff]  ;;  %v339_v15 = vld [vmem:[%s3601_s20 + $0x20] sm:$0xff]  ;;  %v2658_v19 = vor.u32 %v3030_v7, %v2655_v8  ;;  %s3115_s13 = smul.u32 384, %s3520_s28  ;;  %s2361_s22 = sshll.u32 %s4152_s12, 4  ;;  %s2362_s22 = int_to_ptr.vmem [resolvable:$true] %s2361_s22 }
  0x4b   : > { %705 = vmatpush.bf16.msra.mxu0 %v2494_v42  ;;  %v337_v16 = vld [vmem:[%s3601_s20 + $0x10] sm:$0xff]  ;;  %v340_v17 = vld [vmem:[%s3601_s20 + $0x28] sm:$0xff]  ;;  %v3012_v20 = vld [vmem:[#allocation5 + $0xe4] sm:$0xf]  ;;  %v3617_v21 = vpack.c.bf16 %v338_v11, %v335_v10  ;;  %v3619_v25 = vpack.c.bf16 %v339_v15, %v336_v12  ;;  %s2348_s9 = scalar_lea.sflag [#allocation4], %s3595_s5  ;;  %s3397_s16 = scalar_lea.hbm %s4302_s7, 768 }
  0x4c   : > { %754 = vmatpush.bf16.msra.mxu1 %v2558_v43  ;;  %v2583_v22 = vld [vmem:[#allocation5 + $0xe8] sm:$0xf0]  ;;  %v3028_v23 = vld [vmem:[#allocation5 + $0x164] sm:$0xf]  ;;  %v3621_v26 = vpack.c.bf16 %v340_v17, %v337_v16  ;;  %v3010_v29 = vld [vmem:[#allocation5 + $0xd4] sm:$0xf] }
  0x4d   : > { %803 = vmatpush.bf16.msra.mxu2 %v2622_v44  ;;  %v2647_v24 = vld [vmem:[#allocation5 + $0x168] sm:$0xf0]  ;;  %v2586_v27 = vor.u32 %v3012_v20, %v2583_v22  ;;  %v2575_v30 = vld [vmem:[#allocation5 + $0xd8] sm:$0xf0]  ;;  %v3026_v31 = vld [vmem:[#allocation5 + $0x154] sm:$0xf] }
  0x4e   : > { %v2650_v28 = vor.u32 %v3028_v23, %v2647_v24  ;;  %v2639_v32 = vld [vmem:[#allocation5 + $0x158] sm:$0xf0]  ;;  %v2578_v33 = vor.u32 %v3010_v29, %v2575_v30  ;;  %v341_v35 = vld [vmem:[%s3601_s20 + $0x30] sm:$0xff]  ;;  %v344_v36 = vld [vmem:[%s3601_s20 + $0x48] sm:$0xff] }
  0x4f   : > { %706 = vmatpush.bf16.msra.mxu0 %v2486_v51  ;;  %v2642_v34 = vor.u32 %v3026_v31, %v2639_v32  ;;  %v342_v37 = vld [vmem:[%s3601_s20 + $0x38] sm:$0xff]  ;;  %v345_v38 = vld [vmem:[%s3601_s20 + $0x50] sm:$0xff]  ;;  %v343_v39 = vld [vmem:[%s3601_s20 + $0x40] sm:$0xff]  ;;  %v3632_v41 = vpack.c.bf16 %v344_v36, %v341_v35 }
  0x50   : > { %755 = vmatpush.bf16.msra.mxu1 %v2550_v52  ;;  %v346_v40 = vld [vmem:[%s3601_s20 + $0x58] sm:$0xff]  ;;  %v3634_v42 = vpack.c.bf16 %v345_v38, %v342_v37  ;;  %v3008_v44 = vld [vmem:[#allocation5 + $0xc4] sm:$0xf]  ;;  %v2567_v45 = vld [vmem:[#allocation5 + $0xc8] sm:$0xf0] }
  0x51   : > { %804 = vmatpush.bf16.msra.mxu2 %v2614_v53  ;;  %v3636_v43 = vpack.c.bf16 %v346_v40, %v343_v39  ;;  %v3024_v46 = vld [vmem:[#allocation5 + $0x144] sm:$0xf]  ;;  %v2570_v47 = vor.u32 %v3008_v44, %v2567_v45  ;;  %v2631_v48 = vld [vmem:[#allocation5 + $0x148] sm:$0xf0]  ;;  %v350_v51 = vld [vmem:[%s3601_s20 + $0x78] sm:$0xff] }
  0x52   : > { %v2634_v49 = vor.u32 %v3024_v46, %v2631_v48  ;;  %v347_v50 = vld [vmem:[%s3601_s20 + $0x60] sm:$0xff]  ;;  %v348_v52 = vld [vmem:[%s3601_s20 + $0x68] sm:$0xff]  ;;  %v349_v54 = vld [vmem:[%s3601_s20 + $0x70] sm:$0xff] }
  0x53   : > { %707 = vmatpush.bf16.msra.mxu0 %v2478_v60  ;;  %v351_v53 = vld [vmem:[%s3601_s20 + $0x80] sm:$0xff]  ;;  %v352_v55 = vld [vmem:[%s3601_s20 + $0x88] sm:$0xff]  ;;  %v3647_v56 = vpack.c.bf16 %v350_v51, %v347_v50  ;;  %v3006_v59 = vld [vmem:[#allocation5 + $0xb4] sm:$0xf] }
  0x54   : > { %756 = vmatpush.bf16.msra.mxu1 %v2542_v62  ;;  %v3649_v57 = vpack.c.bf16 %v351_v53, %v348_v52  ;;  %v3651_v58 = vpack.c.bf16 %v352_v55, %v349_v54  ;;  %v2559_v60 = vld [vmem:[#allocation5 + $0xb8] sm:$0xf0]  ;;  %v3022_v61 = vld [vmem:[#allocation5 + $0x134] sm:$0xf]  ;;  %v356_v2 = vld [vmem:[%s3601_s20 + $0xa8] sm:$0xff] }
  0x55   : > { %805 = vmatpush.bf16.msra.mxu2 %v2606_v63  ;;  %v2562_v62 = vor.u32 %v3006_v59, %v2559_v60  ;;  %v2623_v63 = vld [vmem:[#allocation5 + $0x138] sm:$0xf0]  ;;  %v353_v1 = vld [vmem:[%s3601_s20 + $0x90] sm:$0xff]  ;;  %v355_v5 = vld [vmem:[%s3601_s20 + $0xa0] sm:$0xff] }
  0x56   : > { %v2626_v0 = vor.u32 %v3022_v61, %v2623_v63  ;;  %v354_v3 = vld [vmem:[%s3601_s20 + $0x98] sm:$0xff]  ;;  %v357_v4 = vld [vmem:[%s3601_s20 + $0xb0] sm:$0xff]  ;;  %v3662_v7 = vpack.c.bf16 %v356_v2, %v353_v1  ;;  %v3020_v15 = vld [vmem:[#allocation5 + $0x124] sm:$0xf] }
  0x57   : > { %708 = vmatpush.bf16.msra.mxu0 %v2470_v9  ;;  %v358_v6 = vld [vmem:[%s3601_s20 + $0xb8] sm:$0xff]  ;;  %v3664_v8 = vpack.c.bf16 %v357_v4, %v354_v3  ;;  %v2998_v10 = vld [vmem:[#allocation5 + $0x74] sm:$0xf]  ;;  %v2615_v17 = vld [vmem:[#allocation5 + $0x128] sm:$0xf0] }
  0x58   : > { %757 = vmatpush.bf16.msra.mxu1 %v2534_v13  ;;  %v3666_v9 = vpack.c.bf16 %v358_v6, %v355_v5  ;;  %v2527_v11 = vld [vmem:[#allocation5 + $0x78] sm:$0xf0]  ;;  %v3004_v13 = vld [vmem:[#allocation5 + $0xa4] sm:$0xf]  ;;  %v2618_v20 = vor.u32 %v3020_v15, %v2615_v17  ;;  %v2994_v23 = vld [vmem:[#allocation5 + $0x54] sm:$0xf] }
  0x59   : > { %806 = vmatpush.bf16.msra.mxu2 %v2598_v14  ;;  %v2530_v12 = vor.u32 %v2998_v10, %v2527_v11  ;;  %v2551_v14 = vld [vmem:[#allocation5 + $0xa8] sm:$0xf0]  ;;  %v2511_v24 = vld [vmem:[#allocation5 + $0x58] sm:$0xf0]  ;;  %v359_v30 = vld [vmem:[%s3601_s20 + $0xc0] sm:$0xff] }
  0x5a   : > { %709 = vmatmul.bf16.vlgmr.msra.gmra.mxu0 %v3617_v21  ;;  %v2554_v16 = vor.u32 %v3004_v13, %v2551_v14  ;;  %v2503_v29 = vld [vmem:[#allocation5 + $0x48] sm:$0xf0]  ;;  %v362_v31 = vld [vmem:[%s3601_s20 + $0xd8] sm:$0xff]  ;;  %v2990_v40 = vld [vmem:[#allocation5 + $0x34] sm:$0xf] }
  0x5b   : > { %897 = vmatpush.bf16.msrb.mxu0 %v2594_v18  ;;  %758 = vmatmul.bf16.vlgmr.msra.gmra.mxu1 %v3619_v25  ;;  %v2996_v18 = vld [vmem:[#allocation5 + $0x64] sm:$0xf]  ;;  %v360_v32 = vld [vmem:[%s3601_s20 + $0xc8] sm:$0xff]  ;;  %v3677_v37 = vpack.c.bf16 %v362_v31, %v359_v30  ;;  %v2495_v44 = vld [vmem:[#allocation5 + $0x38] sm:$0xf0] }
  0x5c   : > { %946 = vmatpush.bf16.msrb.mxu1 %v2658_v19  ;;  %807 = vmatmul.bf16.vlgmr.msra.gmra.mxu2 %v3621_v26  ;;  %v2519_v19 = vld [vmem:[#allocation5 + $0x68] sm:$0xf0]  ;;  %v2498_v45 = vor.u32 %v2990_v40, %v2495_v44  ;;  %v3002_v46 = vld [vmem:[#allocation5 + $0x94] sm:$0xf]  ;;  %v2607_v50 = vld [vmem:[#allocation5 + $0x118] sm:$0xf0] }
  0x5d   : > { %848 = vmatpush.bf16.msra.mxu3 %v2530_v12  ;;  %v2522_v22 = vor.u32 %v2996_v18, %v2519_v19  ;;  %v364_v35 = vld [vmem:[%s3601_s20 + $0xe8] sm:$0xff]  ;;  %v3018_v48 = vld [vmem:[#allocation5 + $0x114] sm:$0xf]  ;;  %v2988_v51 = vld [vmem:[#allocation5 + $0x24] sm:$0xf] }
  0x5e   : > { %v2487_v52 = vld [vmem:[#allocation5 + $0x28] sm:$0xf0]  ;;  %v2610_v53 = vor.u32 %v3018_v48, %v2607_v50  ;;  %v2986_v55 = vld [vmem:[#allocation5 + $0x14] sm:$0xf]  ;;  %v2479_v59 = vld [vmem:[#allocation5 + $0x18] sm:$0xf0] }
  0x5f   : > { %898 = vmatpush.bf16.msrb.mxu0 %v2586_v27  ;;  %v2514_v27 = vor.u32 %v2994_v23, %v2511_v24  ;;  %v2490_v54 = vor.u32 %v2988_v51, %v2487_v52  ;;  %v2482_v60 = vor.u32 %v2986_v55, %v2479_v59  ;;  %v2984_v61 = vld [vmem:[#allocation5 + $0x4] sm:$0xf]  ;;  %v365_v63 = vld [vmem:[%s3601_s20 + $0xf0] sm:$0xff]  ;;  %v366_v1 = vld [vmem:[%s3601_s20 + $0xf8] sm:$0xff] }
  0x60   : > { %947 = vmatpush.bf16.msrb.mxu1 %v2650_v28  ;;  %v2992_v28 = vld [vmem:[#allocation5 + $0x44] sm:$0xf]  ;;  %v369_v2 = vld [vmem:[%s3601_s20 + $0x110] sm:$0xff]  ;;  %v370_v4 = vld [vmem:[%s3601_s20 + $0x118] sm:$0xff] }
  0x61   : > { %849 = vmatpush.bf16.msra.mxu3 %v2522_v22  ;;  %v2506_v36 = vor.u32 %v2992_v28, %v2503_v29  ;;  %v367_v3 = vld [vmem:[%s3601_s20 + $0x100] sm:$0xff]  ;;  %v3694_v10 = vpack.c.bf16 %v369_v2, %v366_v1  ;;  %v2535_v13 = vld [vmem:[#allocation5 + $0x88] sm:$0xf0]  ;;  %v2717_v17 = vld [vmem:[%s4298_s3 + $0x70] sm:$0xf] }
  0x62   : > { %v3696_v11 = vpack.c.bf16 %v370_v4, %v367_v3  ;;  %v3000_v12 = vld [vmem:[#allocation5 + $0x84] sm:$0xf]  ;;  %v3047_v18 = vld [vmem:[%s4298_s3 + $0x74] sm:$0xf0]  ;;  %v3045_v22 = vld [vmem:[%s4298_s3 + $0x64] sm:$0xf0] }
  0x63   : > { %899 = vmatpush.bf16.msrb.mxu0 %v2578_v33  ;;  %v363_v33 = vld [vmem:[%s3601_s20 + $0xe0] sm:$0xff]  ;;  %v2538_v15 = vor.u32 %v3000_v12, %v2535_v13  ;;  %v2701_v24 = vld [vmem:[%s4298_s3 + $0x50] sm:$0xf]  ;;  %v374_v29 = vld [vmem:[%s3601_s20 + $0x138] sm:$0xff] }
  0x64   : > { %948 = vmatpush.bf16.msrb.mxu1 %v2642_v34  ;;  %v361_v34 = vld [vmem:[%s3601_s20 + $0xd0] sm:$0xff]  ;;  %v3679_v38 = vpack.c.bf16 %v363_v33, %v360_v32  ;;  %v3016_v14 = vld [vmem:[#allocation5 + $0x104] sm:$0xf]  ;;  %v372_v30 = vld [vmem:[%s3601_s20 + $0x128] sm:$0xff] }
  0x65   : > { %850 = vmatpush.bf16.msra.mxu3 %v2514_v27  ;;  %v3681_v39 = vpack.c.bf16 %v364_v35, %v361_v34  ;;  %v3043_v27 = vld [vmem:[%s4298_s3 + $0x54] sm:$0xf0]  ;;  %v371_v28 = vld [vmem:[%s3601_s20 + $0x120] sm:$0xff]  ;;  %v373_v33 = vld [vmem:[%s3601_s20 + $0x130] sm:$0xff] }
  0x66   : > { %v2702_v31 = vor.u32 %v3043_v27, %v2701_v24  ;;  %v375_v32 = vld [vmem:[%s3601_s20 + $0x140] sm:$0xff]  ;;  %v376_v34 = vld [vmem:[%s3601_s20 + $0x148] sm:$0xff]  ;;  %v3726_v35 = vpack.c.bf16 %v374_v29, %v371_v28  ;;  %v3039_v48 = vld [vmem:[%s4298_s3 + $0x34] sm:$0xf0] }
  0x67   : > { %900 = vmatpush.bf16.msrb.mxu0 %v2570_v47  ;;  %v2543_v47 = vld [vmem:[#allocation5 + $0x98] sm:$0xf0]  ;;  %v3730_v40 = vpack.c.bf16 %v376_v34, %v373_v33  ;;  %v2693_v44 = vld [vmem:[%s4298_s3 + $0x40] sm:$0xf]  ;;  %v3037_v51 = vld [vmem:[%s4298_s3 + $0x24] sm:$0xf0] }
  0x68   : > { %949 = vmatpush.bf16.msrb.mxu1 %v2634_v49  ;;  %v2546_v49 = vor.u32 %v3002_v46, %v2543_v47  ;;  %v2685_v47 = vld [vmem:[%s4298_s3 + $0x30] sm:$0xf]  ;;  %v2677_v50 = vld [vmem:[%s4298_s3 + $0x20] sm:$0xf]  ;;  %v378_v55 = vld [vmem:[%s3601_s20 + $0x158] sm:$0xff] }
  0x69   : > { %851 = vmatpush.bf16.msra.mxu3 %v2506_v36  ;;  %v3728_v36 = vpack.c.bf16 %v375_v32, %v372_v30  ;;  %v2678_v52 = vor.u32 %v3037_v51, %v2677_v50  ;;  %v2669_v59 = vld [vmem:[%s4298_s3 + $0x10] sm:$0xf]  ;;  %v2661_v3 = vld [vmem:[%s4298_s3] sm:$0xf]  ;;  %v3033_v4 = vld [vmem:[%s4298_s3 + $0x4] sm:$0xf0] }
  0x6a   : > { %714 = vmatmul.bf16.gmra.mxu0 %v3632_v41  ;;  %v2781_v12 = vld [vmem:[%s4298_s3 + $0xf0] sm:$0xf]  ;;  %v3063_v13 = vld [vmem:[%s4298_s3 + $0xf4] sm:$0xf0]  ;;  %v3061_v24 = vld [vmem:[%s4298_s3 + $0xe4] sm:$0xf0] }
  0x6b   : > { %763 = vmatmul.bf16.gmra.mxu1 %v3634_v42  ;;  %901 = vmatpush.bf16.msrb.mxu0 %v2562_v62  ;;  %v2471_v62 = vld [vmem:[#allocation5 + $0x8] sm:$0xf0]  ;;  %v3044_v33 = vld [vmem:[%s4298_s3 + $0x64] sm:$0xf] }
  0x6c   : > { %812 = vmatmul.bf16.gmra.mxu2 %v3636_v43  ;;  %950 = vmatpush.bf16.msrb.mxu1 %v2626_v0  ;;  %v368_v0 = vld [vmem:[%s3601_s20 + $0x108] sm:$0xff]  ;;  %v2474_v5 = vor.u32 %v2984_v61, %v2471_v62  ;;  %v379_v61 = vld [vmem:[%s3601_s20 + $0x160] sm:$0xff]  ;;  %v382_v62 = vld [vmem:[%s3601_s20 + $0x178] sm:$0xff] }
  0x6d   : > { %852 = vmatpush.bf16.msra.mxu3 %v2498_v45  ;;  %v3692_v6 = vpack.c.bf16 %v368_v0, %v365_v63  ;;  %v3041_v45 = vld [vmem:[%s4298_s3 + $0x44] sm:$0xf0]  ;;  %v3770_v2 = vpack.c.bf16 %v382_v62, %v379_v61  ;;  %v2711_v34 = vld [vmem:[%s4298_s3 + $0x68] sm:$0xf0] }
  0x6e   : > { %v2694_v46 = vor.u32 %v3041_v45, %v2693_v44  ;;  %v2775_v44 = vld [vmem:[%s4298_s3 + $0xe8] sm:$0xf0] }
  0x6f   : > { %902 = vmatpush.bf16.msrb.mxu0 %v2554_v16  ;;  %v2599_v16 = vld [vmem:[#allocation5 + $0x108] sm:$0xf0] }
  0x70   : > { %951 = vmatpush.bf16.msrb.mxu1 %v2618_v20  ;;  %v2602_v19 = vor.u32 %v3016_v14, %v2599_v16  ;;  %v2718_v20 = vor.u32 %v3047_v18, %v2717_v17  ;;  %v2782_v14 = vor.u32 %v3063_v13, %v2781_v12  ;;  %v2719_v16 = vld [vmem:[%s4298_s3 + $0x78] sm:$0xf0]  ;;  %v3062_v18 = vld [vmem:[%s4298_s3 + $0xf4] sm:$0xf] }
  0x71   : > { %853 = vmatpush.bf16.msra.mxu3 %v2490_v54  ;;  %v380_v54 = vld [vmem:[%s3601_s20 + $0x168] sm:$0xff]  ;;  %v2767_v12 = vld [vmem:[%s4298_s3 + $0xd8] sm:$0xf0] }
  0x72   : > { %1241 = vmatpush.bf16.msrb.mxu2 %v2718_v20 }
  0x73   : > { %903 = vmatpush.bf16.msrb.mxu0 %v2546_v49  ;;  %v2686_v49 = vor.u32 %v3039_v48, %v2685_v47 }
  0x74   : > { %952 = vmatpush.bf16.msrb.mxu1 %v2610_v53  ;;  %v377_v53 = vld [vmem:[%s3601_s20 + $0x150] sm:$0xff] }
  0x75   : > { %854 = vmatpush.bf16.msra.mxu3 %v2482_v60  ;;  %v381_v60 = vld [vmem:[%s3601_s20 + $0x170] sm:$0xff]  ;;  %v3766_v0 = vpack.c.bf16 %v380_v54, %v377_v53  ;;  %s2360_s20 = scalar_lea.hbm %s4302_s7, %s3115_s13 }
  0x76   : > { %v3768_v1 = vpack.c.bf16 %v381_v60, %v378_v55  ;;  %v2765_v55 = vld [vmem:[%s4298_s3 + $0xd0] sm:$0xf]  ;;  %s2363_s23 = sshll.u32 %s2360_s20, 4  ;;  %s2364_s23 = int_to_ptr.hbm [resolvable:$true] %s2363_s23 }
  0x77   : > { %904 = vmatpush.bf16.msrb.mxu0 %v2538_v15  ;;  %v3046_v15 = vld [vmem:[%s4298_s3 + $0x74] sm:$0xf]  ;;  %s3391_s10 = sshra.s32 %s2364_s23, 4  ;;  %s3392_s10 = int_to_ptr.hbm [resolvable:$true] %s3391_s10 }
  0x78   : > { %953 = vmatpush.bf16.msrb.mxu1 %v2602_v19  ;;  %v2722_v17 = vor.u32 %v3046_v15, %v2719_v16  ;;  %v2783_v19 = vld [vmem:[%s4298_s3 + $0xf8] sm:$0xf0]  ;;  %s3393_s28 = scalar_lea.hbm %s3392_s10, 384  ;;  %p3398_p11 = scmp.lt.s32.totalorder %s3392_s10, %s4302_s7 }
  0x79   : > { %855 = vmatpush.bf16.msra.mxu3 %v2474_v5  ;;  %v2662_v5 = vor.u32 %v3033_v4, %v2661_v3  ;;  %v2786_v20 = vor.u32 %v3062_v18, %v2783_v19  ;;  %v3042_v4 = vld [vmem:[%s4298_s3 + $0x54] sm:$0xf]  ;;  %p3394_p1 = scmp.ne.s32.totalorder %s3392_s10, %s3393_s28  ;;  %p3399_p9 = scmp.lt.s32.totalorder %s3397_s16, %s3393_s28 }
  0x7a   : > { %719 = vmatmul.bf16.gmra.mxu0 %v3647_v56 }
  0x7b   : > { %768 = vmatmul.bf16.gmra.mxu1 %v3649_v57  ;;  %1339 = vmatpush.bf16.msra.mxu0 %v2722_v17  ;;  %p3395_p4 = pnand %p3394_p1, %p3568_p5  ;;  %p3400_p2 = por %p3399_p9, %p3398_p11 }
  0x7c   : > { %817 = vmatmul.bf16.gmra.mxu2 %v3651_v58  ;;  %856 = vmatmul.bf16.vlgmr.msra.gmra.mxu3 %v3617_v21  ;;  %v2709_v21 = vld [vmem:[%s4298_s3 + $0x60] sm:$0xf] }
  0x7d   : > { %v2710_v23 = vor.u32 %v3045_v22, %v2709_v21  ;;  %1290 = vmatpush.bf16.msrb.mxu3 %v2782_v14  ;;  %1388 = vmatpush.bf16.msra.mxu1 %v2786_v20  ;;  %v3803_v21 = vld [vmem:[%s4297_s2] sm:$0x3]  ;;  %p3396_p8 = pneg %p3395_p4 }
  0x7e   : > { %v3813_v27 = vperm.slane %v3803_v21, 0 }
  0x7f   : > { %1242 = vmatpush.bf16.msrb.mxu2 %v2710_v23  ;;  %v2773_v23 = vld [vmem:[%s4298_s3 + $0xe0] sm:$0xf]  ;;  %p3401_p10 = pnand %p3400_p2, %p3396_p8 }
  0x80   : > { %v2774_v28 = vor.u32 %v3061_v24, %v2773_v23  ;;  %v2757_v23 = vld [vmem:[%s4298_s3 + $0xc0] sm:$0xf]  ;;  %v3057_v24 = vld [vmem:[%s4298_s3 + $0xc4] sm:$0xf0] }
  0x82   : > { %1291 = vmatpush.bf16.msrb.mxu3 %v2774_v28 }
  0x83   : > { %1243 = vmatpush.bf16.msrb.mxu2 %v2702_v31 }
  0x87   : > { %1244 = vmatpush.bf16.msrb.mxu2 %v2694_v46 }
  0x8a   : > { %724 = vmatmul.bf16.gmra.mxu0 %v3662_v7 }
  0x8b   : > { %773 = vmatmul.bf16.gmra.mxu1 %v3664_v8  ;;  %1245 = vmatpush.bf16.msrb.mxu2 %v2686_v49 }
  0x8c   : > { %822 = vmatmul.bf16.gmra.mxu2 %v3666_v9  ;;  %861 = vmatmul.bf16.gmra.mxu3 %v3632_v41  ;;  %v3035_v41 = vld [vmem:[%s4298_s3 + $0x14] sm:$0xf0] }
  0x8d   : > { %v2670_v63 = vor.u32 %v3035_v41, %v2669_v59  ;;  %v3059_v59 = vld [vmem:[%s4298_s3 + $0xd4] sm:$0xf0] }
  0x8e   : > { %v2766_v60 = vor.u32 %v3059_v59, %v2765_v55 }
  0x8f   : > { %1246 = vmatpush.bf16.msrb.mxu2 %v2678_v52 }
  0x90   : > { %1292 = vmatpush.bf16.msrb.mxu3 %v2766_v60 }
  0x93   : > { %1247 = vmatpush.bf16.msrb.mxu2 %v2670_v63 }
  0x97   : > { %1248 = vmatpush.bf16.msrb.mxu2 %v2662_v5 }
  0x9a   : > { %729 = vmatmul.bf16.gmra.mxu0 %v3677_v37 }
  0x9b   : > { %778 = vmatmul.bf16.gmra.mxu1 %v3679_v38 }
  0x9c   : > { %827 = vmatmul.bf16.gmra.mxu2 %v3681_v39  ;;  %866 = vmatmul.bf16.gmra.mxu3 %v3647_v56 }
  0xaa   : > { %734 = vmatmul.bf16.gmra.mxu0 %v3692_v6 }
  0xab   : > { %783 = vmatmul.bf16.gmra.mxu1 %v3694_v10 }
  0xac   : > { %832 = vmatmul.bf16.gmra.mxu2 %v3696_v11  ;;  %871 = vmatmul.bf16.gmra.mxu3 %v3662_v7  ;;  %v3060_v7 = vld [vmem:[%s4298_s3 + $0xe4] sm:$0xf] }
  0xad   : > { %v2778_v46 = vor.u32 %v3060_v7, %v2775_v44 }
  0xaf   : > { %1389 = vmatpush.bf16.msra.mxu1 %v2778_v46 }
  0xba   : > { %739 = vmatmul.bf16.gmra.mxu0 %v3726_v35 }
  0xbb   : > { %788 = vmatmul.bf16.gmra.mxu1 %v3728_v36 }
  0xbc   : > { %837 = vmatmul.bf16.gmra.mxu2 %v3730_v40  ;;  %876 = vmatmul.bf16.gmra.mxu3 %v3677_v37  ;;  %v3058_v37 = vld [vmem:[%s4298_s3 + $0xd4] sm:$0xf] }
  0xbd   : > { %v2770_v14 = vor.u32 %v3058_v37, %v2767_v12 }
  0xbf   : > { %1390 = vmatpush.bf16.msra.mxu1 %v2770_v14 }
  0xca   : > { %744 = vmatmul.bf16.gmra.mxu0 %v3766_v0 }
  0xcb   : > { %793 = vmatmul.bf16.gmra.mxu1 %v3768_v1 }
  0xcc   : > { %842 = vmatmul.bf16.gmra.mxu2 %v3770_v2  ;;  %881 = vmatmul.bf16.gmra.mxu3 %v3692_v6  ;;  %v3056_v6 = vld [vmem:[%s4298_s3 + $0xc4] sm:$0xf] }
  0xd7   : > { %v710_v56 = vpop.f32.mrf.mxu0 }
  0xd8   : > { %v759_v22 = vpop.f32.mrf.mxu1 }
  0xda   : > { %905 = vmatmul.bf16.vlgmr.msrb.gmra.mxu0 %v3619_v25  ;;  %v711_v25 = vadd.f32 %v710_v56, %v3813_v27 }
  0xdb   : > { %954 = vmatmul.bf16.vlgmr.msrb.gmra.mxu1 %v3621_v26  ;;  %v2714_v26 = vor.u32 %v3044_v33, %v2711_v34  ;;  %v3040_v33 = vld [vmem:[%s4298_s3 + $0x44] sm:$0xf] }
  0xdc   : > { %v760_v45 = vadd.f32 %v759_v22, %v711_v25  ;;  %886 = vmatmul.bf16.gmra.mxu3 %v3726_v35  ;;  %v3054_v35 = vld [vmem:[%s4298_s3 + $0xb4] sm:$0xf] }
  0xdd   : > { %1340 = vmatpush.bf16.msra.mxu0 %v2714_v26  ;;  %v2759_v26 = vld [vmem:[%s4298_s3 + $0xc8] sm:$0xf0] }
  0xde   : > { %v2762_v44 = vor.u32 %v3056_v6, %v2759_v26 }
  0xdf   : > { %v808_v29 = vpop.f32.mrf.mxu2  ;;  %v712_v30 = vpop.f32.mrf.mxu0 }
  0xe0   : > { %v761_v31 = vpop.f32.mrf.mxu1  ;;  %v713_v32 = vadd.f32 %v712_v30, %v3813_v27  ;;  %v809_v47 = vadd.f32 %v808_v29, %v760_v45  ;;  %v2758_v29 = vor.u32 %v3057_v24, %v2757_v23  ;;  %1391 = vmatpush.bf16.msra.mxu1 %v2762_v44 }
  0xe2   : > { %v762_v48 = vadd.f32 %v761_v31, %v713_v32  ;;  %v995_v53 = vmax.f32 %v809_v47, 0.0  ;;  %1293 = vmatpush.bf16.msrb.mxu3 %v2758_v29 }
  0xe7   : > { %v810_v49 = vpop.f32.mrf.mxu2  ;;  %v715_v51 = vpop.f32.mrf.mxu0 }
  0xe8   : > { %v811_v50 = vadd.f32 %v810_v49, %v762_v48  ;;  %v764_v52 = vpop.f32.mrf.mxu1 }
  0xea   : > { %v997_v54 = vmax.f32 %v811_v50, 0.0  ;;  %910 = vmatmul.bf16.gmra.mxu0 %v3634_v42  ;;  %v716_v42 = vadd.f32 %v715_v51, %v3813_v27 }
  0xeb   : > { %959 = vmatmul.bf16.gmra.mxu1 %v3636_v43  ;;  %v2703_v43 = vld [vmem:[%s4298_s3 + $0x58] sm:$0xf0] }
  0xec   : > { %v3839_v41 = vpack.c.bf16 %v997_v54, %v995_v53  ;;  %v2706_v5 = vor.u32 %v3042_v4, %v2703_v43  ;;  %v765_v13 = vadd.f32 %v764_v52, %v716_v42  ;;  %v2749_v53 = vld [vmem:[%s4298_s3 + $0xb0] sm:$0xf]  ;;  %v3055_v54 = vld [vmem:[%s4298_s3 + $0xb4] sm:$0xf0]  ;;  %v2751_v4 = vld [vmem:[%s4298_s3 + $0xb8] sm:$0xf0]  ;;  %891 = vmatmul.bf16.gmra.mxu3 %v3766_v0 }
  0xed   : > { %v2750_v59 = vor.u32 %v3055_v54, %v2749_v53  ;;  %v3052_v0 = vld [vmem:[%s4298_s3 + $0xa4] sm:$0xf] }
  0xee   : > { %1249 = vmatmul.bf16.vlgmr.msrb.gmra.mxu2 %v3839_v41  ;;  %1341 = vmatpush.bf16.msra.mxu0 %v2706_v5  ;;  %v2754_v5 = vor.u32 %v3054_v35, %v2751_v4  ;;  %v3032_v35 = vld [vmem:[%s4298_s3 + $0x4] sm:$0xf]  ;;  %v2663_v4 = vld [vmem:[%s4298_s3 + $0x8] sm:$0xf0] }
  0xef   : > { %v813_v61 = vpop.f32.mrf.mxu2  ;;  %v717_v62 = vpop.f32.mrf.mxu0  ;;  %1294 = vmatpush.bf16.msrb.mxu3 %v2750_v59  ;;  %v3034_v59 = vld [vmem:[%s4298_s3 + $0x14] sm:$0xf] }
  0xf0   : > { %v766_v63 = vpop.f32.mrf.mxu1  ;;  %v718_v3 = vadd.f32 %v717_v62, %v3813_v27  ;;  %v814_v15 = vadd.f32 %v813_v61, %v765_v13  ;;  %1392 = vmatpush.bf16.msra.mxu1 %v2754_v5  ;;  %v2666_v5 = vor.u32 %v3032_v35, %v2663_v4 }
  0xf2   : > { %v767_v16 = vadd.f32 %v766_v63, %v718_v3  ;;  %v999_v56 = vmax.f32 %v814_v15, 0.0  ;;  %v3038_v63 = vld [vmem:[%s4298_s3 + $0x34] sm:$0xf] }
  0xf7   : > { %v815_v17 = vpop.f32.mrf.mxu2  ;;  %v720_v19 = vpop.f32.mrf.mxu0 }
  0xf8   : > { %v816_v18 = vadd.f32 %v815_v17, %v767_v16  ;;  %v769_v20 = vpop.f32.mrf.mxu1 }
  0xfa   : > { %v1001_v22 = vmax.f32 %v816_v18, 0.0  ;;  %915 = vmatmul.bf16.gmra.mxu0 %v3649_v57  ;;  %v721_v57 = vadd.f32 %v720_v19, %v3813_v27  ;;  %v2741_v19 = vld [vmem:[%s4298_s3 + $0xa0] sm:$0xf] }
  0xfb   : > { %964 = vmatmul.bf16.gmra.mxu1 %v3651_v58  ;;  %v2695_v58 = vld [vmem:[%s4298_s3 + $0x48] sm:$0xf0] }
  0xfc   : > { %v3865_v28 = vpack.c.bf16 %v1001_v22, %v999_v56  ;;  %v2698_v34 = vor.u32 %v3040_v33, %v2695_v58  ;;  %v770_v7 = vadd.f32 %v769_v20, %v721_v57  ;;  %v3053_v20 = vld [vmem:[%s4298_s3 + $0xa4] sm:$0xf0]  ;;  %v3036_v57 = vld [vmem:[%s4298_s3 + $0x24] sm:$0xf] }
  0xfd   : > { %v2742_v22 = vor.u32 %v3053_v20, %v2741_v19 }
  0xfe   : > { %1254 = vmatmul.bf16.gmra.mxu2 %v3865_v28  ;;  %1342 = vmatpush.bf16.msra.mxu0 %v2698_v34 }
  0xff   : > { %v818_v25 = vpop.f32.mrf.mxu2  ;;  %v722_v30 = vpop.f32.mrf.mxu0  ;;  %1295 = vmatpush.bf16.msrb.mxu3 %v2742_v22 }
 0x100   : > { %v771_v31 = vpop.f32.mrf.mxu1  ;;  %v723_v32 = vadd.f32 %v722_v30, %v3813_v27  ;;  %v819_v45 = vadd.f32 %v818_v25, %v770_v7 }
 0x102   : > { %v772_v46 = vadd.f32 %v771_v31, %v723_v32  ;;  %v1003_v51 = vmax.f32 %v819_v45, 0.0  ;;  %v2743_v31 = vld [vmem:[%s4298_s3 + $0xa8] sm:$0xf0] }
 0x103   : > { %v2746_v33 = vor.u32 %v3052_v0, %v2743_v31 }
 0x105   : > { %1393 = vmatpush.bf16.msra.mxu1 %v2746_v33 }
 0x107   : > { %v820_v47 = vpop.f32.mrf.mxu2  ;;  %v725_v49 = vpop.f32.mrf.mxu0 }
 0x108   : > { %v821_v48 = vadd.f32 %v820_v47, %v772_v46  ;;  %v774_v50 = vpop.f32.mrf.mxu1  ;;  %v2733_v47 = vld [vmem:[%s4298_s3 + $0x90] sm:$0xf] }
 0x10a   : > { %v1005_v52 = vmax.f32 %v821_v48, 0.0  ;;  %920 = vmatmul.bf16.gmra.mxu0 %v3664_v8  ;;  %v726_v8 = vadd.f32 %v725_v49, %v3813_v27  ;;  %v3051_v48 = vld [vmem:[%s4298_s3 + $0x94] sm:$0xf0] }
 0x10b   : > { %969 = vmatmul.bf16.gmra.mxu1 %v3666_v9  ;;  %v2687_v9 = vld [vmem:[%s4298_s3 + $0x38] sm:$0xf0] }
 0x10c   : > { %v3891_v55 = vpack.c.bf16 %v1005_v52, %v1003_v51  ;;  %v2690_v3 = vor.u32 %v3038_v63, %v2687_v9  ;;  %v775_v43 = vadd.f32 %v774_v50, %v726_v8  ;;  %v2734_v50 = vor.u32 %v3051_v48, %v2733_v47  ;;  %v3050_v8 = vld [vmem:[%s4298_s3 + $0x94] sm:$0xf] }
 0x10e   : > { %1259 = vmatmul.bf16.gmra.mxu2 %v3891_v55  ;;  %1343 = vmatpush.bf16.msra.mxu0 %v2690_v3  ;;  %v857_v3 = vpop.f32.mrf.mxu3 }
 0x10f   : > { %v823_v60 = vpop.f32.mrf.mxu2  ;;  %v727_v61 = vpop.f32.mrf.mxu0  ;;  %1296 = vmatpush.bf16.msrb.mxu3 %v2734_v50 }
 0x110   : > { %v776_v42 = vpop.f32.mrf.mxu1  ;;  %v728_v62 = vadd.f32 %v727_v61, %v3813_v27  ;;  %v824_v37 = vadd.f32 %v823_v60, %v775_v43  ;;  %v2735_v61 = vld [vmem:[%s4298_s3 + $0x98] sm:$0xf0] }
 0x112   : > { %v777_v12 = vadd.f32 %v776_v42, %v728_v62  ;;  %v1007_v17 = vmax.f32 %v824_v37, 0.0  ;;  %v2738_v62 = vor.u32 %v3050_v8, %v2735_v61  ;;  %v2873_v61 = vld [vmem:[#allocation7 + $0xa8] sm:$0xf] }
 0x114   : > { %1394 = vmatpush.bf16.msra.mxu1 %v2738_v62 }
 0x117   : > { %v825_v13 = vpop.f32.mrf.mxu2  ;;  %v730_v15 = vpop.f32.mrf.mxu0 }
 0x118   : > { %v826_v14 = vadd.f32 %v825_v13, %v777_v12  ;;  %v779_v16 = vpop.f32.mrf.mxu1 }
 0x11a   : > { %v1009_v18 = vmax.f32 %v826_v14, 0.0  ;;  %925 = vmatmul.bf16.gmra.mxu0 %v3679_v38  ;;  %v731_v38 = vadd.f32 %v730_v15, %v3813_v27 }
 0x11b   : > { %974 = vmatmul.bf16.gmra.mxu1 %v3681_v39  ;;  %v2679_v39 = vld [vmem:[%s4298_s3 + $0x28] sm:$0xf0] }
 0x11c   : > { %v3917_v56 = vpack.c.bf16 %v1009_v18, %v1007_v17  ;;  %v2682_v30 = vor.u32 %v3036_v57, %v2679_v39  ;;  %v780_v32 = vadd.f32 %v779_v16, %v731_v38  ;;  %v2725_v17 = vld [vmem:[%s4298_s3 + $0x80] sm:$0xf]  ;;  %v3049_v18 = vld [vmem:[%s4298_s3 + $0x84] sm:$0xf0] }
 0x11d   : > { %v2726_v19 = vor.u32 %v3049_v18, %v2725_v17 }
 0x11e   : > { %1264 = vmatmul.bf16.gmra.mxu2 %v3917_v56  ;;  %1344 = vmatpush.bf16.msra.mxu0 %v2682_v30 }
 0x11f   : > { %v828_v23 = vpop.f32.mrf.mxu2  ;;  %v732_v24 = vpop.f32.mrf.mxu0  ;;  %1297 = vmatpush.bf16.msrb.mxu3 %v2726_v19 }
 0x120   : > { %v781_v29 = vpop.f32.mrf.mxu1  ;;  %v733_v25 = vadd.f32 %v732_v24, %v3813_v27  ;;  %v829_v58 = vadd.f32 %v828_v23, %v780_v32 }
 0x122   : > { %v782_v34 = vadd.f32 %v781_v29, %v733_v25  ;;  %v1011_v45 = vmax.f32 %v829_v58, 0.0  ;;  %v3048_v29 = vld [vmem:[%s4298_s3 + $0x84] sm:$0xf]  ;;  %v2727_v25 = vld [vmem:[%s4298_s3 + $0x88] sm:$0xf0] }
 0x123   : > { %v2730_v57 = vor.u32 %v3048_v29, %v2727_v25 }
 0x125   : > { %1395 = vmatpush.bf16.msra.mxu1 %v2730_v57 }
 0x127   : > { %v830_v6 = vpop.f32.mrf.mxu2  ;;  %v735_v7 = vpop.f32.mrf.mxu0 }
 0x128   : > { %v831_v26 = vadd.f32 %v830_v6, %v782_v34  ;;  %v784_v44 = vpop.f32.mrf.mxu1  ;;  %v736_v52 = vadd.f32 %v735_v7, %v3813_v27 }
 0x12a   : > { %v1013_v46 = vmax.f32 %v831_v26, 0.0  ;;  %930 = vmatmul.bf16.gmra.mxu0 %v3694_v10  ;;  %v785_v42 = vadd.f32 %v784_v44, %v736_v52 }
 0x12b   : > { %979 = vmatmul.bf16.gmra.mxu1 %v3696_v11  ;;  %v2671_v11 = vld [vmem:[%s4298_s3 + $0x18] sm:$0xf0] }
 0x12c   : > { %v3943_v49 = vpack.c.bf16 %v1013_v46, %v1011_v45  ;;  %v2674_v60 = vor.u32 %v3034_v59, %v2671_v11 }
 0x12e   : > { %1269 = vmatmul.bf16.gmra.mxu2 %v3943_v49  ;;  %1345 = vmatpush.bf16.msra.mxu0 %v2674_v60 }
 0x12f   : > { %v833_v51 = vpop.f32.mrf.mxu2  ;;  %v737_v10 = vpop.f32.mrf.mxu0 }
 0x130   : > { %v786_v53 = vpop.f32.mrf.mxu1  ;;  %v738_v54 = vadd.f32 %v737_v10, %v3813_v27  ;;  %v834_v63 = vadd.f32 %v833_v51, %v785_v42  ;;  %v3993_v51 = vperm.slane %v3803_v21, 1  ;;  %v3086_v42 = vld [vmem:[#allocation7 + $0xb0] sm:$0xf0] }
 0x131   : > { %v2874_v62 = vor.u32 %v3086_v42, %v2873_v61 }
 0x132   : > { %v787_v9 = vadd.f32 %v786_v53, %v738_v54  ;;  %1346 = vmatpush.bf16.msra.mxu0 %v2666_v5  ;;  %v1015_v14 = vmax.f32 %v834_v63, 0.0  ;;  %v858_v54 = vadd.f32 %v857_v3, %v3993_v51  ;;  %v2969_v63 = vld [vmem:[#allocation7 + $0x168] sm:$0xf] }
 0x133   : > { %1813 = vmatpush.bf16.msra.mxu2 %v2874_v62 }
 0x137   : > { %v835_v43 = vpop.f32.mrf.mxu2  ;;  %v740_v12 = vpop.f32.mrf.mxu0 }
 0x138   : > { %v836_v37 = vadd.f32 %v835_v43, %v787_v9  ;;  %v789_v13 = vpop.f32.mrf.mxu1  ;;  %v741_v22 = vadd.f32 %v740_v12, %v3813_v27  ;;  %v3110_v9 = vld [vmem:[#allocation7 + $0x170] sm:$0xf0] }
 0x139   : > { %v2970_v4 = vor.u32 %v3110_v9, %v2969_v63  ;;  %v2837_v63 = vld [vmem:[#allocation7 + $0x60] sm:$0xf]  ;;  %v3077_v9 = vld [vmem:[#allocation7 + $0x68] sm:$0xf0] }
 0x13a   : > { %v1017_v15 = vmax.f32 %v836_v37, 0.0  ;;  %935 = vmatmul.bf16.gmra.mxu0 %v3728_v36  ;;  %v859_v36 = vpop.f32.mrf.mxu3  ;;  %v790_v24 = vadd.f32 %v789_v13, %v741_v22  ;;  %v2861_v22 = vld [vmem:[#allocation7 + $0x90] sm:$0xf] }
 0x13b   : > { %984 = vmatmul.bf16.gmra.mxu1 %v3730_v40  ;;  %v860_v35 = vadd.f32 %v859_v36, %v3993_v51  ;;  %1862 = vmatpush.bf16.msra.mxu3 %v2970_v4  ;;  %v2933_v4 = vld [vmem:[#allocation7 + $0x120] sm:$0xf] }
 0x13c   : > { %v3968_v16 = vpack.c.bf16 %v1017_v15, %v1015_v14 }
 0x13e   : > { %1274 = vmatmul.bf16.gmra.mxu2 %v3968_v16 }
 0x13f   : > { %v838_v20 = vpop.f32.mrf.mxu2  ;;  %v742_v23 = vpop.f32.mrf.mxu0 }
 0x140   : > { %v791_v40 = vpop.f32.mrf.mxu1  ;;  %v743_v38 = vadd.f32 %v742_v23, %v3813_v27  ;;  %v839_v39 = vadd.f32 %v838_v20, %v790_v24  ;;  %v3083_v23 = vld [vmem:[#allocation7 + $0x98] sm:$0xf0] }
 0x141   : > { %v2862_v36 = vor.u32 %v3083_v23, %v2861_v22 }
 0x142   : > { %v792_v30 = vadd.f32 %v791_v40, %v743_v38  ;;  %v1019_v58 = vmax.f32 %v839_v39, 0.0  ;;  %v862_v6 = vpop.f32.mrf.mxu3  ;;  %v2957_v40 = vld [vmem:[#allocation7 + $0x150] sm:$0xf]  ;;  %v3107_v38 = vld [vmem:[#allocation7 + $0x158] sm:$0xf0] }
 0x143   : > { %v863_v18 = vadd.f32 %v862_v6, %v3993_v51  ;;  %v2958_v29 = vor.u32 %v3107_v38, %v2957_v40  ;;  %1814 = vmatpush.bf16.msra.mxu2 %v2862_v36  ;;  %v2825_v40 = vld [vmem:[#allocation7 + $0x48] sm:$0xf]  ;;  %v3074_v38 = vld [vmem:[#allocation7 + $0x50] sm:$0xf0] }
 0x145   : > { %1863 = vmatpush.bf16.msra.mxu3 %v2958_v29  ;;  %v2921_v29 = vld [vmem:[#allocation7 + $0x108] sm:$0xf] }
 0x147   : > { %v840_v0 = vpop.f32.mrf.mxu2  ;;  %v745_v32 = vpop.f32.mrf.mxu0 }
 0x148   : > { %v841_v31 = vadd.f32 %v840_v0, %v792_v30  ;;  %v794_v33 = vpop.f32.mrf.mxu1  ;;  %v746_v44 = vadd.f32 %v745_v32, %v3813_v27 }
 0x14a   : > { %v1021_v34 = vmax.f32 %v841_v31, 0.0  ;;  %940 = vmatmul.bf16.gmra.mxu0 %v3768_v1  ;;  %v795_v48 = vadd.f32 %v794_v33, %v746_v44  ;;  %v864_v50 = vpop.f32.mrf.mxu3 }
 0x14b   : > { %989 = vmatmul.bf16.gmra.mxu1 %v3770_v2  ;;  %v865_v24 = vadd.f32 %v864_v50, %v3993_v51  ;;  %v3104_v50 = vld [vmem:[#allocation7 + $0x140] sm:$0xf0] }
 0x14c   : > { %v3987_v26 = vpack.c.bf16 %v1021_v34, %v1019_v58 }
 0x14e   : > { %1279 = vmatmul.bf16.gmra.mxu2 %v3987_v26 }
 0x14f   : > { %v843_v7 = vpop.f32.mrf.mxu2  ;;  %v747_v45 = vpop.f32.mrf.mxu0 }
 0x150   : > { %v796_v46 = vpop.f32.mrf.mxu1  ;;  %v748_v47 = vadd.f32 %v747_v45, %v3813_v27  ;;  %v844_v52 = vadd.f32 %v843_v7, %v795_v48  ;;  %v2849_v45 = vld [vmem:[#allocation7 + $0x78] sm:$0xf] }
 0x151   : > { %v2945_v48 = vld [vmem:[#allocation7 + $0x138] sm:$0xf] }
 0x152   : > { %v797_v1 = vadd.f32 %v796_v46, %v748_v47  ;;  %v1023_v11 = vmax.f32 %v844_v52, 0.0  ;;  %v867_v21 = vpop.f32.mrf.mxu3  ;;  %v3080_v46 = vld [vmem:[#allocation7 + $0x80] sm:$0xf0] }
 0x153   : > { %v868_v34 = vadd.f32 %v867_v21, %v3993_v51  ;;  %v2850_v47 = vor.u32 %v3080_v46, %v2849_v45  ;;  %v2813_v46 = vld [vmem:[#allocation7 + $0x30] sm:$0xf] }
 0x155   : > { %1815 = vmatpush.bf16.msra.mxu2 %v2850_v47  ;;  %v3071_v47 = vld [vmem:[#allocation7 + $0x38] sm:$0xf0] }
 0x157   : > { %v845_v10 = vpop.f32.mrf.mxu2  ;;  %v906_v53 = vpop.f32.mrf.mxu0 }
 0x158   : > { %v846_v2 = vadd.f32 %v845_v10, %v797_v1  ;;  %v955_v59 = vpop.f32.mrf.mxu1  ;;  %v907_v27 = vadd.f32 %v906_v53, %v858_v54  ;;  %v2946_v1 = vor.u32 %v3104_v50, %v2945_v48  ;;  %v2814_v50 = vor.u32 %v3071_v47, %v2813_v46 }
 0x15a   : > { %v1025_v60 = vmax.f32 %v846_v2, 0.0  ;;  %1347 = vmatmul.bf16.vlgmr.msra.gmra.mxu0 %v3839_v41  ;;  %v956_v43 = vadd.f32 %v955_v59, %v907_v27  ;;  %v869_v17 = vpop.f32.mrf.mxu3  ;;  %1864 = vmatpush.bf16.msra.mxu3 %v2946_v1  ;;  %v3095_v1 = vld [vmem:[#allocation7 + $0xf8] sm:$0xf0] }
 0x15b   : > { %v870_v52 = vadd.f32 %v869_v17, %v3993_v51 }
 0x15c   : > { %v3997_v8 = vpack.c.bf16 %v1025_v60, %v1023_v11  ;;  %v996_v12 = vmax.f32 %v956_v43, 0.0 }
 0x15e   : > { %1284 = vmatmul.bf16.gmra.mxu2 %v3997_v8 }
 0x15f   : > { %v908_v3 = vpop.f32.mrf.mxu0 }
 0x160   : > { %v909_v5 = vadd.f32 %v908_v3, %v860_v35  ;;  %v957_v37 = vpop.f32.mrf.mxu1  ;;  %v2838_v35 = vor.u32 %v3077_v9, %v2837_v63  ;;  %v3101_v3 = vld [vmem:[#allocation7 + $0x128] sm:$0xf0]  ;;  %v3106_v9 = vld [vmem:[#allocation7 + $0x154] sm:$0xf] }
 0x162   : > { %v958_v41 = vadd.f32 %v957_v37, %v909_v5  ;;  %v872_v0 = vpop.f32.mrf.mxu3  ;;  %v2934_v5 = vor.u32 %v3101_v3, %v2933_v4  ;;  %1816 = vmatpush.bf16.msra.mxu2 %v2838_v35  ;;  %v2959_v35 = vld [vmem:[#allocation7 + $0x15c] sm:$0xf0] }
 0x163   : > { %v873_v42 = vadd.f32 %v872_v0, %v3993_v51 }
 0x164   : > { %v998_v13 = vmax.f32 %v958_v41, 0.0  ;;  %1865 = vmatpush.bf16.msra.mxu3 %v2934_v5  ;;  %v2801_v5 = vld [vmem:[#allocation7 + $0x18] sm:$0xf] }
 0x166   : > { %v1028_v14 = vpack.c.bf16 %v998_v13, %v996_v12 }
 0x167   : > { %v911_v15 = vpop.f32.mrf.mxu0 }
 0x168   : > { %v960_v19 = vpop.f32.mrf.mxu1  ;;  %1298 = vmatmul.bf16.vlgmr.msrb.gmra.mxu3 %v1028_v14  ;;  %1396 = vmatmul.bf16.vlgmr.msra.gmra.mxu1 %v1028_v14  ;;  %v912_v20 = vadd.f32 %v911_v15, %v863_v18 }
 0x16a   : > { %1352 = vmatmul.bf16.gmra.mxu0 %v3865_v28  ;;  %v961_v57 = vadd.f32 %v960_v19, %v912_v20  ;;  %v874_v7 = vpop.f32.mrf.mxu3 }
 0x16b   : > { %v875_v43 = vadd.f32 %v874_v7, %v3993_v51 }
 0x16c   : > { %v1000_v32 = vmax.f32 %v961_v57, 0.0 }
 0x16f   : > { %v913_v25 = vpop.f32.mrf.mxu0 }
 0x170   : > { %v914_v39 = vadd.f32 %v913_v25, %v865_v24  ;;  %v962_v30 = vpop.f32.mrf.mxu1  ;;  %v2826_v24 = vor.u32 %v3074_v38, %v2825_v40  ;;  %v3098_v25 = vld [vmem:[#allocation7 + $0x110] sm:$0xf0] }
 0x172   : > { %v963_v31 = vadd.f32 %v962_v30, %v914_v39  ;;  %v2922_v39 = vor.u32 %v3098_v25, %v2921_v29  ;;  %1817 = vmatpush.bf16.msra.mxu2 %v2826_v24  ;;  %v3100_v24 = vld [vmem:[#allocation7 + $0x124] sm:$0xf]  ;;  %v2935_v29 = vld [vmem:[#allocation7 + $0x12c] sm:$0xf0] }
 0x174   : > { %v1002_v33 = vmax.f32 %v963_v31, 0.0  ;;  %1866 = vmatpush.bf16.msra.mxu3 %v2922_v39 }
 0x176   : > { %v1030_v28 = vpack.c.bf16 %v1002_v33, %v1000_v32  ;;  %1818 = vmatpush.bf16.msra.mxu2 %v2814_v50  ;;  %v3094_v50 = vld [vmem:[#allocation7 + $0xf4] sm:$0xf] }
 0x177   : > { %v916_v58 = vpop.f32.mrf.mxu0 }
 0x178   : > { %v965_v6 = vpop.f32.mrf.mxu1  ;;  %1303 = vmatmul.bf16.gmra.mxu3 %v1030_v28  ;;  %1401 = vmatmul.bf16.gmra.mxu1 %v1030_v28  ;;  %v917_v44 = vadd.f32 %v916_v58, %v868_v34 }
 0x17a   : > { %1357 = vmatmul.bf16.gmra.mxu0 %v3891_v55  ;;  %v966_v2 = vadd.f32 %v965_v6, %v917_v44  ;;  %v877_v55 = vpop.f32.mrf.mxu3 }
 0x17b   : > { %v878_v20 = vadd.f32 %v877_v55, %v3993_v51  ;;  %v3109_v55 = vld [vmem:[#allocation7 + $0x16c] sm:$0xf] }
 0x17c   : > { %v1004_v11 = vmax.f32 %v966_v2, 0.0 }
 0x17f   : > { %v918_v10 = vpop.f32.mrf.mxu0 }
 0x180   : > { %v919_v53 = vadd.f32 %v918_v10, %v870_v52  ;;  %v967_v54 = vpop.f32.mrf.mxu1  ;;  %v2909_v52 = vld [vmem:[#allocation7 + $0xf0] sm:$0xf] }
 0x181   : > { %v2910_v2 = vor.u32 %v3095_v1, %v2909_v52  ;;  %v2911_v52 = vld [vmem:[#allocation7 + $0xfc] sm:$0xf0] }
 0x182   : > { %v968_v59 = vadd.f32 %v967_v54, %v919_v53  ;;  %v879_v41 = vpop.f32.mrf.mxu3 }
 0x183   : > { %v880_v57 = vadd.f32 %v879_v41, %v3993_v51  ;;  %1867 = vmatpush.bf16.msra.mxu3 %v2910_v2  ;;  %v3085_v41 = vld [vmem:[#allocation7 + $0xac] sm:$0xf]  ;;  %v2914_v2 = vor.u32 %v3094_v50, %v2911_v52 }
 0x184   : > { %v1006_v60 = vmax.f32 %v968_v59, 0.0 }
 0x186   : > { %v1032_v27 = vpack.c.bf16 %v1006_v60, %v1004_v11 }
 0x187   : > { %v921_v61 = vpop.f32.mrf.mxu0 }
 0x188   : > { %v970_v21 = vpop.f32.mrf.mxu1  ;;  %1308 = vmatmul.bf16.gmra.mxu3 %v1032_v27  ;;  %1406 = vmatmul.bf16.gmra.mxu1 %v1032_v27  ;;  %v922_v62 = vadd.f32 %v921_v61, %v873_v42  ;;  %v2971_v27 = vld [vmem:[#allocation7 + $0x174] sm:$0xf0] }
 0x189   : > { %v2974_v42 = vor.u32 %v3109_v55, %v2971_v27  ;;  %v2827_v55 = vld [vmem:[#allocation7 + $0x54] sm:$0xf0] }
 0x18a   : > { %1362 = vmatmul.bf16.gmra.mxu0 %v3917_v56  ;;  %v971_v12 = vadd.f32 %v970_v21, %v922_v62  ;;  %v882_v23 = vpop.f32.mrf.mxu3 }
 0x18b   : > { %v883_v7 = vadd.f32 %v882_v23, %v3993_v51  ;;  %1960 = vmatpush.bf16.msrb.mxu1 %v2974_v42  ;;  %v3082_v23 = vld [vmem:[#allocation7 + $0x94] sm:$0xf]  ;;  %v2899_v42 = vld [vmem:[#allocation7 + $0xe4] sm:$0xf0] }
 0x18c   : > { %v1008_v17 = vmax.f32 %v971_v12, 0.0 }
 0x18f   : > { %v923_v37 = vpop.f32.mrf.mxu0 }
 0x190   : > { %v924_v13 = vadd.f32 %v923_v37, %v875_v43  ;;  %v972_v14 = vpop.f32.mrf.mxu1  ;;  %v2962_v43 = vor.u32 %v3106_v9, %v2959_v35  ;;  %v3068_v37 = vld [vmem:[#allocation7 + $0x20] sm:$0xf0]  ;;  %v2815_v9 = vld [vmem:[#allocation7 + $0x3c] sm:$0xf0] }
 0x191   : > { %v2802_v12 = vor.u32 %v3068_v37, %v2801_v5  ;;  %v3088_v37 = vld [vmem:[#allocation7 + $0xc4] sm:$0xf] }
 0x192   : > { %v973_v15 = vadd.f32 %v972_v14, %v924_v13  ;;  %v884_v28 = vpop.f32.mrf.mxu3  ;;  %1961 = vmatpush.bf16.msrb.mxu1 %v2962_v43  ;;  %v2875_v13 = vld [vmem:[#allocation7 + $0xb4] sm:$0xf0] }
 0x193   : > { %v885_v10 = vadd.f32 %v884_v28, %v3993_v51  ;;  %v2897_v14 = vld [vmem:[#allocation7 + $0xd8] sm:$0xf]  ;;  %1819 = vmatpush.bf16.msra.mxu2 %v2802_v12 }
 0x194   : > { %v1010_v18 = vmax.f32 %v973_v15, 0.0  ;;  %v3092_v15 = vld [vmem:[#allocation7 + $0xe0] sm:$0xf0] }
 0x196   : > { %v1034_v56 = vpack.c.bf16 %v1010_v18, %v1008_v17  ;;  %v2878_v17 = vor.u32 %v3085_v41, %v2875_v13  ;;  %v2898_v18 = vor.u32 %v3092_v15, %v2897_v14  ;;  %v2887_v41 = vld [vmem:[#allocation7 + $0xcc] sm:$0xf0] }
 0x197   : > { %v926_v19 = vpop.f32.mrf.mxu0  ;;  %v2890_v14 = vor.u32 %v3088_v37, %v2887_v41 }
 0x198   : > { %v975_v22 = vpop.f32.mrf.mxu1  ;;  %1313 = vmatmul.bf16.gmra.mxu3 %v1034_v56  ;;  %1411 = vmatmul.bf16.gmra.mxu1 %v1034_v56  ;;  %v927_v36 = vadd.f32 %v926_v19, %v878_v20  ;;  %v3103_v56 = vld [vmem:[#allocation7 + $0x13c] sm:$0xf]  ;;  %v2947_v19 = vld [vmem:[#allocation7 + $0x144] sm:$0xf0] }
 0x199   : > { %1911 = vmatpush.bf16.msrb.mxu0 %v2878_v17  ;;  %1868 = vmatpush.bf16.msra.mxu3 %v2898_v18  ;;  %v3067_v17 = vld [vmem:[#allocation7 + $0x1c] sm:$0xf]  ;;  %v2803_v18 = vld [vmem:[#allocation7 + $0x24] sm:$0xf0] }
 0x19a   : > { %1367 = vmatmul.bf16.gmra.mxu0 %v3943_v49  ;;  %v976_v0 = vadd.f32 %v975_v22, %v927_v36  ;;  %v887_v48 = vpop.f32.mrf.mxu3  ;;  %v2950_v22 = vor.u32 %v3103_v56, %v2947_v19  ;;  %v2863_v36 = vld [vmem:[#allocation7 + $0x9c] sm:$0xf0]  ;;  %v2806_v19 = vor.u32 %v3067_v17, %v2803_v18  ;;  %v3105_v17 = vld [vmem:[#allocation7 + $0x148] sm:$0xf0] }
 0x19b   : > { %v888_v4 = vadd.f32 %v887_v48, %v3993_v51 }
 0x19c   : > { %v1012_v58 = vmax.f32 %v976_v0, 0.0  ;;  %1962 = vmatpush.bf16.msrb.mxu1 %v2950_v22 }
 0x19f   : > { %v928_v30 = vpop.f32.mrf.mxu0 }
 0x1a0   : > { %v929_v31 = vadd.f32 %v928_v30, %v880_v57  ;;  %v977_v32 = vpop.f32.mrf.mxu1  ;;  %v2938_v30 = vor.u32 %v3100_v24, %v2935_v29  ;;  %v2881_v24 = vld [vmem:[#allocation7 + $0xb0] sm:$0xf]  ;;  %v3087_v29 = vld [vmem:[#allocation7 + $0xb8] sm:$0xf0] }
 0x1a2   : > { %v978_v33 = vadd.f32 %v977_v32, %v929_v31  ;;  %v889_v62 = vpop.f32.mrf.mxu3  ;;  %v3079_v31 = vld [vmem:[#allocation7 + $0x7c] sm:$0xf]  ;;  %v2851_v32 = vld [vmem:[#allocation7 + $0x84] sm:$0xf0]  ;;  %1963 = vmatpush.bf16.msrb.mxu1 %v2938_v30 }
 0x1a3   : > { %v890_v40 = vadd.f32 %v889_v62, %v3993_v51  ;;  %v2854_v28 = vor.u32 %v3079_v31, %v2851_v32  ;;  %v3111_v30 = vld [vmem:[#allocation7 + $0x178] sm:$0xf0]  ;;  %v1075_v32 = vld [vmem:[%s4299_s4] sm:$0x3] }
 0x1a4   : > { %v1014_v34 = vmax.f32 %v978_v33, 0.0 }
 0x1a6   : > { %v1036_v49 = vpack.c.bf16 %v1014_v34, %v1012_v58  ;;  %v3097_v58 = vld [vmem:[#allocation7 + $0x10c] sm:$0xf]  ;;  %v2923_v34 = vld [vmem:[#allocation7 + $0x114] sm:$0xf0] }
 0x1a7   : > { %v931_v6 = vpop.f32.mrf.mxu0 }
 0x1a8   : > { %v980_v44 = vpop.f32.mrf.mxu1  ;;  %1318 = vmatmul.bf16.gmra.mxu3 %v1036_v49  ;;  %1416 = vmatmul.bf16.gmra.mxu1 %v1036_v49  ;;  %v932_v45 = vadd.f32 %v931_v6, %v883_v7  ;;  %v2926_v7 = vor.u32 %v3097_v58, %v2923_v34 }
 0x1aa   : > { %1372 = vmatmul.bf16.gmra.mxu0 %v3968_v16  ;;  %v981_v54 = vadd.f32 %v980_v44, %v932_v45  ;;  %v892_v0 = vpop.f32.mrf.mxu3  ;;  %v3076_v44 = vld [vmem:[#allocation7 + $0x64] sm:$0xf]  ;;  %v2839_v45 = vld [vmem:[#allocation7 + $0x6c] sm:$0xf0]  ;;  %1964 = vmatpush.bf16.msrb.mxu1 %v2926_v7 }
 0x1ab   : > { %v2842_v47 = vor.u32 %v3076_v44, %v2839_v45  ;;  %v893_v1 = vadd.f32 %v892_v0, %v3993_v51  ;;  %v3084_v7 = vld [vmem:[#allocation7 + $0xa0] sm:$0xf0] }
 0x1ac   : > { %v1016_v16 = vmax.f32 %v981_v54, 0.0  ;;  %v2789_v54 = vld [vmem:[#allocation7] sm:$0xf] }
 0x1ae   : > { %1965 = vmatpush.bf16.msrb.mxu1 %v2914_v2 }
 0x1af   : > { %v933_v53 = vpop.f32.mrf.mxu0 }
 0x1b0   : > { %v934_v59 = vadd.f32 %v933_v53, %v885_v10  ;;  %v982_v11 = vpop.f32.mrf.mxu1  ;;  %v4020_v53 = vpop.f32.mrf.mxu2 }
 0x1b2   : > { %v983_v60 = vadd.f32 %v982_v11, %v934_v59  ;;  %v3065_v59 = vld [vmem:[#allocation7 + $0x8] sm:$0xf0]  ;;  %v894_v27 = vpop.f32.mrf.mxu3 }
 0x1b3   : > { %v3073_v11 = vld [vmem:[#allocation7 + $0x4c] sm:$0xf]  ;;  %v895_v35 = vadd.f32 %v894_v27, %v3993_v51 }
 0x1b4   : > { %v1018_v61 = vmax.f32 %v983_v60, 0.0  ;;  %v2790_v60 = vor.u32 %v3065_v59, %v2789_v54 }
 0x1b6   : > { %v1038_v21 = vpack.c.bf16 %v1018_v61, %v1016_v16  ;;  %v2830_v16 = vor.u32 %v3073_v11, %v2827_v55  ;;  %v3091_v61 = vld [vmem:[#allocation7 + $0xdc] sm:$0xf]  ;;  %1820 = vmatpush.bf16.msra.mxu2 %v2790_v60 }
 0x1b7   : > { %v936_v63 = vpop.f32.mrf.mxu0  ;;  %v2902_v62 = vor.u32 %v3091_v61, %v2899_v42 }
 0x1b8   : > { %v985_v3 = vpop.f32.mrf.mxu1  ;;  %1323 = vmatmul.bf16.gmra.mxu3 %v1038_v21  ;;  %1421 = vmatmul.bf16.gmra.mxu1 %v1038_v21  ;;  %v937_v20 = vadd.f32 %v936_v63, %v888_v4  ;;  %v3070_v63 = vld [vmem:[#allocation7 + $0x34] sm:$0xf]  ;;  %v2885_v4 = vld [vmem:[#allocation7 + $0xc0] sm:$0xf]  ;;  %v1252_v51 = vpop.f32.mrf.mxu2 }
 0x1b9   : > { %1966 = vmatpush.bf16.msrb.mxu1 %v2902_v62  ;;  %v2818_v43 = vor.u32 %v3070_v63, %v2815_v9 }
 0x1ba   : > { %1377 = vmatmul.bf16.gmra.mxu0 %v3987_v26  ;;  %v2866_v26 = vor.u32 %v3082_v23, %v2863_v36  ;;  %v986_v25 = vadd.f32 %v985_v3, %v937_v20  ;;  %v3089_v3 = vld [vmem:[#allocation7 + $0xc8] sm:$0xf0]  ;;  %v3064_v23 = vld [vmem:[#allocation7 + $0x4] sm:$0xf]  ;;  %v2791_v36 = vld [vmem:[#allocation7 + $0xc] sm:$0xf0] }
 0x1bb   : > { %v2886_v5 = vor.u32 %v3089_v3, %v2885_v4  ;;  %v2857_v3 = vld [vmem:[#allocation7 + $0x80] sm:$0xf] }
 0x1bc   : > { %1912 = vmatpush.bf16.msrb.mxu0 %v2866_v26  ;;  %v1020_v49 = vmax.f32 %v986_v25, 0.0  ;;  %v2794_v26 = vor.u32 %v3064_v23, %v2791_v36  ;;  %v2882_v25 = vor.u32 %v3087_v29, %v2881_v24 }
 0x1bd   : > { %1869 = vmatpush.bf16.msra.mxu3 %v2886_v5  ;;  %1967 = vmatpush.bf16.msrb.mxu1 %v2890_v14 }
 0x1be   : > { %2009 = vmatpush.bf16.msrb.mxu2 %v2882_v25 }
 0x1bf   : > { %v938_v38 = vpop.f32.mrf.mxu0 }
 0x1c0   : > { %v939_v57 = vadd.f32 %v938_v38, %v890_v40  ;;  %v987_v39 = vpop.f32.mrf.mxu1  ;;  %1913 = vmatpush.bf16.msrb.mxu0 %v2854_v28  ;;  %v4027_v28 = vperm.slane %v1075_v32, 1 }
 0x1c2   : > { %v988_v33 = vadd.f32 %v987_v39, %v939_v57  ;;  %v1255_v57 = vpop.f32.mrf.mxu2  ;;  %v2977_v39 = vld [vmem:[#allocation7 + $0x170] sm:$0xf] }
 0x1c3   : > { %v2978_v31 = vor.u32 %v3111_v30, %v2977_v39 }
 0x1c4   : > { %v1022_v6 = vmax.f32 %v988_v33, 0.0  ;;  %1914 = vmatpush.bf16.msrb.mxu0 %v2842_v47 }
 0x1c5   : > { %2058 = vmatpush.bf16.msrb.mxu3 %v2978_v31  ;;  %v3078_v31 = vld [vmem:[#allocation7 + $0x70] sm:$0xf0] }
 0x1c6   : > { %v1040_v46 = vpack.c.bf16 %v1022_v6, %v1020_v49  ;;  %v2869_v6 = vld [vmem:[#allocation7 + $0x98] sm:$0xf] }
 0x1c7   : > { %v941_v48 = vpop.f32.mrf.mxu0  ;;  %v2870_v45 = vor.u32 %v3084_v7, %v2869_v6  ;;  %v2941_v7 = vld [vmem:[#allocation7 + $0x128] sm:$0xf] }
 0x1c8   : > { %v990_v10 = vpop.f32.mrf.mxu1  ;;  %1328 = vmatmul.bf16.gmra.mxu3 %v1040_v46  ;;  %1426 = vmatmul.bf16.gmra.mxu1 %v1040_v46  ;;  %v942_v21 = vadd.f32 %v941_v48, %v893_v1  ;;  %v4030_v46 = vperm.slane %v1075_v32, 0  ;;  %v2965_v1 = vld [vmem:[#allocation7 + $0x158] sm:$0xf] }
 0x1c9   : > { %1915 = vmatpush.bf16.msrb.mxu0 %v2830_v16  ;;  %2010 = vmatpush.bf16.msrb.mxu2 %v2870_v45 }
 0x1ca   : > { %1382 = vmatmul.bf16.gmra.mxu0 %v3997_v8  ;;  %v991_v12 = vadd.f32 %v990_v10, %v942_v21  ;;  %v1257_v58 = vpop.f32.mrf.mxu2  ;;  %v3108_v10 = vld [vmem:[#allocation7 + $0x160] sm:$0xf0]  ;;  %v1251_v59 = vadd.f32 %v4020_v53, %v4030_v46  ;;  %v1253_v27 = vadd.f32 %v1252_v51, %v4030_v46 }
 0x1cb   : > { %v2966_v54 = vor.u32 %v3108_v10, %v2965_v1 }
 0x1cc   : > { %v1024_v20 = vmax.f32 %v991_v12, 0.0 }
 0x1cd   : > { %1916 = vmatpush.bf16.msrb.mxu0 %v2818_v43  ;;  %2059 = vmatpush.bf16.msrb.mxu3 %v2966_v54  ;;  %v3081_v43 = vld [vmem:[#allocation7 + $0x88] sm:$0xf0] }
 0x1ce   : > { %v2858_v37 = vor.u32 %v3081_v43, %v2857_v3 }
 0x1cf   : > { %v943_v8 = vpop.f32.mrf.mxu0 }
 0x1d0   : > { %v944_v13 = vadd.f32 %v943_v8, %v895_v35  ;;  %v992_v15 = vpop.f32.mrf.mxu1  ;;  %2011 = vmatpush.bf16.msrb.mxu2 %v2858_v37  ;;  %v2929_v37 = vld [vmem:[#allocation7 + $0x110] sm:$0xf] }
 0x1d1   : > { %1917 = vmatpush.bf16.msrb.mxu0 %v2806_v19  ;;  %v1256_v19 = vadd.f32 %v1255_v57, %v4030_v46 }
 0x1d2   : > { %v993_v56 = vadd.f32 %v992_v15, %v944_v13  ;;  %v4035_v55 = vpop.f32.mrf.mxu2  ;;  %v2953_v15 = vld [vmem:[#allocation7 + $0x140] sm:$0xf] }
 0x1d4   : > { %v1026_v22 = vmax.f32 %v993_v56, 0.0  ;;  %v2954_v56 = vor.u32 %v3105_v17, %v2953_v15 }
 0x1d5   : > { %1918 = vmatpush.bf16.msrb.mxu0 %v2794_v26 }
 0x1d6   : > { %v1042_v40 = vpack.c.bf16 %v1026_v22, %v1024_v20  ;;  %2060 = vmatpush.bf16.msrb.mxu3 %v2954_v56  ;;  %v1258_v22 = vadd.f32 %v1257_v58, %v4030_v46 }
 0x1d7   : > { %v1348_v38 = vpop.f32.mrf.mxu0 }
 0x1d8   : > { %1333 = vmatmul.bf16.gmra.mxu3 %v1042_v40  ;;  %1431 = vmatmul.bf16.gmra.mxu1 %v1042_v40  ;;  %v1349_v49 = vadd.f32 %v1348_v38, %v4027_v28 }
 0x1da   : > { %v1262_v8 = vpop.f32.mrf.mxu2 }
 0x1db   : > { %v1263_v10 = vadd.f32 %v1262_v8, %v4030_v46 }
 0x1df   : > { %v1350_v0 = vpop.f32.mrf.mxu0 }
 0x1e0   : > { %v1351_v47 = vadd.f32 %v1350_v0, %v4027_v28  ;;  %v2845_v0 = vld [vmem:[#allocation7 + $0x68] sm:$0xf] }
 0x1e2   : > { %v1265_v38 = vpop.f32.mrf.mxu2 }
 0x1e5   : > { %v1397_v33 = vpop.f32.mrf.mxu1 }
 0x1e6   : > { %v1398_v48 = vadd.f32 %v1397_v33, %v1349_v49  ;;  %v2846_v33 = vor.u32 %v3078_v31, %v2845_v0 }
 0x1e7   : > { %v1353_v34 = vpop.f32.mrf.mxu0 }
 0x1e8   : > { %v1438_v11 = vmax.f32 %v1398_v48, 0.0  ;;  %v1354_v4 = vadd.f32 %v1353_v34, %v4027_v28  ;;  %2012 = vmatpush.bf16.msrb.mxu2 %v2846_v33 }
 0x1ea   : > { %v1267_v45 = vpop.f32.mrf.mxu2 }
 0x1eb   : > { %v1299_v44 = vpop.f32.mrf.mxu3 }
 0x1ec   : > { %v1300_v16 = vadd.f32 %v1299_v44, %v1251_v59  ;;  %v3102_v44 = vld [vmem:[#allocation7 + $0x130] sm:$0xf0] }
 0x1ed   : > { %v1399_v50 = vpop.f32.mrf.mxu1  ;;  %v2942_v48 = vor.u32 %v3102_v44, %v2941_v7 }
 0x1ee   : > { %v1400_v52 = vadd.f32 %v1399_v50, %v1351_v47  ;;  %v1437_v63 = vmax.f32 %v1300_v16, 0.0  ;;  %v1261_v50 = vadd.f32 %v4035_v55, %v4030_v46 }
 0x1ef   : > { %v1355_v2 = vpop.f32.mrf.mxu0  ;;  %2061 = vmatpush.bf16.msrb.mxu3 %v2942_v48 }
 0x1f0   : > { %v1440_v60 = vmax.f32 %v1400_v52, 0.0  ;;  %v1356_v41 = vadd.f32 %v1355_v2, %v4027_v28 }
 0x1f2   : > { %v4038_v61 = vpack.c.bf16 %v1440_v60, %v1438_v11  ;;  %v1270_v55 = vpop.f32.mrf.mxu2 }
 0x1f3   : > { %v1301_v42 = vpop.f32.mrf.mxu3  ;;  %v1271_v44 = vadd.f32 %v1270_v55, %v4030_v46  ;;  %v2809_v55 = vld [vmem:[#allocation7 + $0x20] sm:$0xf] }
 0x1f4   : > { %v1302_v21 = vadd.f32 %v1301_v42, %v1253_v27  ;;  %1870 = vmatmul.bf16.vlgmr.msra.gmra.mxu3 %v4038_v61  ;;  %1968 = vmatmul.bf16.vlgmr.msrb.gmra.mxu1 %v4038_v61 }
 0x1f5   : > { %v1402_v62 = vpop.f32.mrf.mxu1 }
 0x1f6   : > { %v1439_v9 = vmax.f32 %v1302_v21, 0.0  ;;  %v1403_v12 = vadd.f32 %v1402_v62, %v1354_v4 }
 0x1f7   : > { %v1358_v53 = vpop.f32.mrf.mxu0 }
 0x1f8   : > { %v4042_v35 = vpack.c.bf16 %v1439_v9, %v1437_v63  ;;  %v1442_v51 = vmax.f32 %v1403_v12, 0.0  ;;  %v1359_v30 = vadd.f32 %v1358_v53, %v4027_v28  ;;  %v2833_v63 = vld [vmem:[#allocation7 + $0x50] sm:$0xf]  ;;  %v3075_v9 = vld [vmem:[#allocation7 + $0x58] sm:$0xf0] }
 0x1f9   : > { %v2834_v4 = vor.u32 %v3075_v9, %v2833_v63 }
 0x1fa   : > { %1821 = vmatmul.bf16.vlgmr.msra.gmra.mxu2 %v4042_v35  ;;  %1919 = vmatmul.bf16.vlgmr.msrb.gmra.mxu0 %v4042_v35 }
 0x1fb   : > { %v1304_v5 = vpop.f32.mrf.mxu3  ;;  %2013 = vmatpush.bf16.msrb.mxu2 %v2834_v4 }
 0x1fc   : > { %v1305_v23 = vadd.f32 %v1304_v5, %v1256_v19 }
 0x1fd   : > { %v1404_v13 = vpop.f32.mrf.mxu1 }
 0x1fe   : > { %v1405_v14 = vadd.f32 %v1404_v13, %v1356_v41  ;;  %v1441_v29 = vmax.f32 %v1305_v23, 0.0  ;;  %v3099_v41 = vld [vmem:[#allocation7 + $0x118] sm:$0xf0] }
 0x1ff   : > { %v1360_v18 = vpop.f32.mrf.mxu0  ;;  %v2930_v13 = vor.u32 %v3099_v41, %v2929_v37  ;;  %v3093_v37 = vld [vmem:[#allocation7 + $0xe8] sm:$0xf0] }
 0x200   : > { %v1444_v20 = vmax.f32 %v1405_v14, 0.0  ;;  %v1361_v58 = vadd.f32 %v1360_v18, %v4027_v28  ;;  %v1266_v14 = vadd.f32 %v1265_v38, %v4030_v46  ;;  %v1268_v18 = vadd.f32 %v1267_v45, %v4030_v46 }
 0x201   : > { %2062 = vmatpush.bf16.msrb.mxu3 %v2930_v13 }
 0x202   : > { %v4050_v36 = vpack.c.bf16 %v1444_v20, %v1442_v51  ;;  %v1272_v51 = vpop.f32.mrf.mxu2 }
 0x203   : > { %v1306_v40 = vpop.f32.mrf.mxu3 }
 0x204   : > { %v1307_v26 = vadd.f32 %v1306_v40, %v1258_v22  ;;  %1875 = vmatmul.bf16.gmra.mxu3 %v4050_v36  ;;  %1973 = vmatmul.bf16.gmra.mxu1 %v4050_v36 }
 0x205   : > { %v1407_v24 = vpop.f32.mrf.mxu1 }
 0x206   : > { %v1443_v25 = vmax.f32 %v1307_v26, 0.0  ;;  %v1408_v34 = vadd.f32 %v1407_v24, %v1359_v30 }
 0x207   : > { %v1363_v39 = vpop.f32.mrf.mxu0 }
 0x208   : > { %v4054_v57 = vpack.c.bf16 %v1443_v25, %v1441_v29  ;;  %v1446_v52 = vmax.f32 %v1408_v34, 0.0  ;;  %v1364_v62 = vadd.f32 %v1363_v39, %v4027_v28  ;;  %v2821_v25 = vld [vmem:[#allocation7 + $0x38] sm:$0xf]  ;;  %v3072_v39 = vld [vmem:[#allocation7 + $0x40] sm:$0xf0] }
 0x209   : > { %v2822_v0 = vor.u32 %v3072_v39, %v2821_v25  ;;  %v2797_v25 = vld [vmem:[#allocation7 + $0x8] sm:$0xf]  ;;  %v3066_v39 = vld [vmem:[#allocation7 + $0x10] sm:$0xf0] }
 0x20a   : > { %1826 = vmatmul.bf16.gmra.mxu2 %v4054_v57  ;;  %1924 = vmatmul.bf16.gmra.mxu0 %v4054_v57  ;;  %v1275_v33 = vpop.f32.mrf.mxu2 }
 0x20b   : > { %v1309_v32 = vpop.f32.mrf.mxu3  ;;  %2014 = vmatpush.bf16.msrb.mxu2 %v2822_v0 }
 0x20c   : > { %v1310_v2 = vadd.f32 %v1309_v32, %v1261_v50  ;;  %v1273_v50 = vadd.f32 %v1272_v51, %v4030_v46 }
 0x20d   : > { %v1409_v49 = vpop.f32.mrf.mxu1 }
 0x20e   : > { %v1410_v6 = vadd.f32 %v1409_v49, %v1361_v58  ;;  %v1445_v27 = vmax.f32 %v1310_v2, 0.0  ;;  %v2917_v49 = vld [vmem:[#allocation7 + $0xf8] sm:$0xf] }
 0x20f   : > { %v1365_v47 = vpop.f32.mrf.mxu0 }
 0x210   : > { %v1448_v1 = vmax.f32 %v1410_v6, 0.0  ;;  %v1366_v3 = vadd.f32 %v1365_v47, %v4027_v28  ;;  %v3096_v6 = vld [vmem:[#allocation7 + $0x100] sm:$0xf0] }
 0x211   : > { %v2918_v7 = vor.u32 %v3096_v6, %v2917_v49 }
 0x212   : > { %v4063_v54 = vpack.c.bf16 %v1448_v1, %v1446_v52 }
 0x213   : > { %v1311_v59 = vpop.f32.mrf.mxu3  ;;  %2063 = vmatpush.bf16.msrb.mxu3 %v2918_v7 }
 0x214   : > { %v1312_v11 = vadd.f32 %v1311_v59, %v1263_v10  ;;  %1880 = vmatmul.bf16.gmra.mxu3 %v4063_v54  ;;  %1978 = vmatmul.bf16.gmra.mxu1 %v4063_v54 }
 0x215   : > { %v1412_v60 = vpop.f32.mrf.mxu1 }
 0x216   : > { %v1447_v16 = vmax.f32 %v1312_v11, 0.0  ;;  %v1413_v43 = vadd.f32 %v1412_v60, %v1364_v62  ;;  %v3069_v62 = vld [vmem:[#allocation7 + $0x28] sm:$0xf0] }
 0x217   : > { %v1368_v42 = vpop.f32.mrf.mxu0 }
 0x218   : > { %v4067_v21 = vpack.c.bf16 %v1447_v16, %v1445_v27  ;;  %v1450_v15 = vmax.f32 %v1413_v43, 0.0  ;;  %v1369_v29 = vadd.f32 %v1368_v42, %v4027_v28  ;;  %v1277_v27 = vpop.f32.mrf.mxu2 }
 0x21a   : > { %1831 = vmatmul.bf16.gmra.mxu2 %v4067_v21  ;;  %1929 = vmatmul.bf16.gmra.mxu0 %v4067_v21 }
 0x21b   : > { %v1314_v53 = vpop.f32.mrf.mxu3 }
 0x21c   : > { %v1315_v56 = vadd.f32 %v1314_v53, %v1266_v14  ;;  %v2810_v53 = vor.u32 %v3069_v62, %v2809_v55 }
 0x21d   : > { %v1414_v8 = vpop.f32.mrf.mxu1 }
 0x21e   : > { %v1415_v5 = vadd.f32 %v1414_v8, %v1366_v3  ;;  %v1449_v40 = vmax.f32 %v1315_v56, 0.0  ;;  %2015 = vmatpush.bf16.msrb.mxu2 %v2810_v53 }
 0x21f   : > { %v1370_v12 = vpop.f32.mrf.mxu0 }
 0x220   : > { %v1452_v17 = vmax.f32 %v1415_v5, 0.0  ;;  %v1371_v31 = vadd.f32 %v1370_v12, %v4027_v28  ;;  %v2905_v5 = vld [vmem:[#allocation7 + $0xe0] sm:$0xf]  ;;  %v1276_v12 = vadd.f32 %v1275_v33, %v4030_v46  ;;  %v3090_v33 = vld [vmem:[#allocation7 + $0xd0] sm:$0xf0] }
 0x221   : > { %v2906_v41 = vor.u32 %v3093_v37, %v2905_v5 }
 0x222   : > { %v4075_v19 = vpack.c.bf16 %v1452_v17, %v1450_v15  ;;  %v1280_v15 = vpop.f32.mrf.mxu2  ;;  %v1278_v17 = vadd.f32 %v1277_v27, %v4030_v46 }
 0x223   : > { %v1316_v20 = vpop.f32.mrf.mxu3  ;;  %2064 = vmatpush.bf16.msrb.mxu3 %v2906_v41 }
 0x224   : > { %v1317_v22 = vadd.f32 %v1316_v20, %v1268_v18  ;;  %1885 = vmatmul.bf16.gmra.mxu3 %v4075_v19  ;;  %1983 = vmatmul.bf16.gmra.mxu1 %v4075_v19 }
 0x225   : > { %v1417_v23 = vpop.f32.mrf.mxu1 }
 0x226   : > { %v1451_v26 = vmax.f32 %v1317_v22, 0.0  ;;  %v1418_v32 = vadd.f32 %v1417_v23, %v1369_v29 }
 0x227   : > { %v1373_v24 = vpop.f32.mrf.mxu0 }
 0x228   : > { %v4079_v38 = vpack.c.bf16 %v1451_v26, %v1449_v40  ;;  %v1454_v45 = vmax.f32 %v1418_v32, 0.0  ;;  %v1374_v42 = vadd.f32 %v1373_v24, %v4027_v28  ;;  %v2798_v32 = vor.u32 %v3066_v39, %v2797_v25 }
 0x22a   : > { %1836 = vmatmul.bf16.gmra.mxu2 %v4079_v38  ;;  %1934 = vmatmul.bf16.gmra.mxu0 %v4079_v38  ;;  %v1282_v0 = vpop.f32.mrf.mxu2 }
 0x22b   : > { %v1319_v30 = vpop.f32.mrf.mxu3  ;;  %2016 = vmatpush.bf16.msrb.mxu2 %v2798_v32 }
 0x22c   : > { %v1320_v52 = vadd.f32 %v1319_v30, %v1271_v44  ;;  %v2893_v30 = vld [vmem:[#allocation7 + $0xc8] sm:$0xf] }
 0x22d   : > { %v1419_v58 = vpop.f32.mrf.mxu1  ;;  %v2894_v49 = vor.u32 %v3090_v33, %v2893_v30 }
 0x22e   : > { %v1420_v34 = vadd.f32 %v1419_v58, %v1371_v31  ;;  %v1453_v11 = vmax.f32 %v1320_v52, 0.0 }
 0x22f   : > { %v1375_v48 = vpop.f32.mrf.mxu0  ;;  %2065 = vmatpush.bf16.msrb.mxu3 %v2894_v49 }
 0x230   : > { %v1456_v47 = vmax.f32 %v1420_v34, 0.0  ;;  %v1376_v4 = vadd.f32 %v1375_v48, %v4027_v28 }
 0x232   : > { %v4087_v1 = vpack.c.bf16 %v1456_v47, %v1454_v45  ;;  %v1281_v45 = vadd.f32 %v1280_v15, %v4030_v46 }
 0x233   : > { %v1321_v10 = vpop.f32.mrf.mxu3 }
 0x234   : > { %v1322_v2 = vadd.f32 %v1321_v10, %v1273_v50  ;;  %1890 = vmatmul.bf16.gmra.mxu3 %v4087_v1  ;;  %1988 = vmatmul.bf16.gmra.mxu1 %v4087_v1  ;;  %v1283_v50 = vadd.f32 %v1282_v0, %v4030_v46 }
 0x235   : > { %v1422_v59 = vpop.f32.mrf.mxu1 }
 0x236   : > { %v1455_v60 = vmax.f32 %v1322_v2, 0.0  ;;  %v1423_v3 = vadd.f32 %v1422_v59, %v1374_v42 }
 0x237   : > { %v1378_v63 = vpop.f32.mrf.mxu0 }
 0x238   : > { %v4091_v16 = vpack.c.bf16 %v1455_v60, %v1453_v11  ;;  %v1458_v13 = vmax.f32 %v1423_v3, 0.0  ;;  %v1379_v29 = vadd.f32 %v1378_v63, %v4027_v28  ;;  %v1285_v11 = vpop.f32.mrf.mxu2 }
 0x239   : > { %v1286_v5 = vadd.f32 %v1285_v11, %v4030_v46 }
 0x23a   : > { %1841 = vmatmul.bf16.gmra.mxu2 %v4091_v16  ;;  %1939 = vmatmul.bf16.gmra.mxu0 %v4091_v16 }
 0x23b   : > { %v1324_v9 = vpop.f32.mrf.mxu3 }
 0x23c   : > { %v1325_v18 = vadd.f32 %v1324_v9, %v1276_v12 }
 0x23d   : > { %v1424_v43 = vpop.f32.mrf.mxu1 }
 0x23e   : > { %v1425_v8 = vadd.f32 %v1424_v43, %v1376_v4  ;;  %v1457_v40 = vmax.f32 %v1325_v18, 0.0 }
 0x23f   : > { %v1380_v22 = vpop.f32.mrf.mxu0 }
 0x240   : > { %v1460_v14 = vmax.f32 %v1425_v8, 0.0  ;;  %v1381_v58 = vadd.f32 %v1380_v22, %v4027_v28  ;;  %v1287_v8 = vpop.f32.mrf.mxu2 }
 0x241   : > { %v1288_v12 = vadd.f32 %v1287_v8, %v4030_v46  ;;  %v4134_v46 = vld [vmem:[%s4301_s6] sm:$0x7] }
 0x242   : > { %v4099_v56 = vpack.c.bf16 %v1460_v14, %v1458_v13  ;;  %v4138_v22 = vperm.slane %v4134_v46, 1  ;;  %v4143_v39 = vperm.slane %v4134_v46, 0 }
 0x243   : > { %v1326_v51 = vpop.f32.mrf.mxu3 }
 0x244   : > { %v1327_v20 = vadd.f32 %v1326_v51, %v1278_v17  ;;  %1895 = vmatmul.bf16.gmra.mxu3 %v4099_v56  ;;  %1993 = vmatmul.bf16.gmra.mxu1 %v4099_v56 }
 0x245   : > { %v1427_v23 = vpop.f32.mrf.mxu1 }
 0x246   : > { %v1459_v26 = vmax.f32 %v1327_v20, 0.0  ;;  %v1428_v34 = vadd.f32 %v1427_v23, %v1379_v29 }
 0x247   : > { %v1383_v44 = vpop.f32.mrf.mxu0 }
 0x248   : > { %v4103_v24 = vpack.c.bf16 %v1459_v26, %v1457_v40  ;;  %v1462_v47 = vmax.f32 %v1428_v34, 0.0  ;;  %v1384_v63 = vadd.f32 %v1383_v44, %v4027_v28 }
 0x24a   : > { %1846 = vmatmul.bf16.gmra.mxu2 %v4103_v24  ;;  %1944 = vmatmul.bf16.gmra.mxu0 %v4103_v24 }
 0x24b   : > { %v1329_v31 = vpop.f32.mrf.mxu3 }
 0x24c   : > { %v1330_v52 = vadd.f32 %v1329_v31, %v1281_v45 }
 0x24d   : > { %v1429_v6 = vpop.f32.mrf.mxu1 }
 0x24e   : > { %v1430_v7 = vadd.f32 %v1429_v6, %v1381_v58  ;;  %v1461_v27 = vmax.f32 %v1330_v52, 0.0 }
 0x24f   : > { %v1385_v62 = vpop.f32.mrf.mxu0 }
 0x250   : > { %v1464_v48 = vmax.f32 %v1430_v7, 0.0  ;;  %v1386_v53 = vadd.f32 %v1385_v62, %v4027_v28 }
 0x252   : > { %v4111_v10 = vpack.c.bf16 %v1464_v48, %v1462_v47 }
 0x253   : > { %v1331_v2 = vpop.f32.mrf.mxu3 }
 0x254   : > { %v1332_v59 = vadd.f32 %v1331_v2, %v1283_v50  ;;  %1900 = vmatmul.bf16.gmra.mxu3 %v4111_v10  ;;  %1998 = vmatmul.bf16.gmra.mxu1 %v4111_v10 }
 0x255   : > { %v1432_v60 = vpop.f32.mrf.mxu1 }
 0x256   : > { %v1463_v42 = vmax.f32 %v1332_v59, 0.0  ;;  %v1433_v4 = vadd.f32 %v1432_v60, %v1384_v63 }
 0x258   : > { %v4115_v55 = vpack.c.bf16 %v1463_v42, %v1461_v27  ;;  %v1466_v37 = vmax.f32 %v1433_v4, 0.0 }
 0x25a   : > { %1851 = vmatmul.bf16.gmra.mxu2 %v4115_v55  ;;  %1949 = vmatmul.bf16.gmra.mxu0 %v4115_v55 }
 0x25b   : > { %v1334_v9 = vpop.f32.mrf.mxu3 }
 0x25c   : > { %v1335_v13 = vadd.f32 %v1334_v9, %v1286_v5 }
 0x25d   : > { %v1434_v3 = vpop.f32.mrf.mxu1 }
 0x25e   : > { %v1435_v43 = vadd.f32 %v1434_v3, %v1386_v53  ;;  %v1465_v28 = vmax.f32 %v1335_v13, 0.0 }
 0x260   : > { %v1468_v41 = vmax.f32 %v1435_v43, 0.0 }
 0x262   : > { %v4123_v14 = vpack.c.bf16 %v1468_v41, %v1466_v37 }
 0x263   : > { %v1336_v15 = vpop.f32.mrf.mxu3 }
 0x264   : > { %v1337_v17 = vadd.f32 %v1336_v15, %v1288_v12  ;;  %1905 = vmatmul.bf16.gmra.mxu3 %v4123_v14  ;;  %2003 = vmatmul.bf16.gmra.mxu1 %v4123_v14 }
 0x266   : > { %v1467_v18 = vmax.f32 %v1337_v17, 0.0 }
 0x268   : > { %v4127_v51 = vpack.c.bf16 %v1467_v18, %v1465_v28 }
 0x26a   : > { %1856 = vmatmul.bf16.gmra.mxu2 %v4127_v51  ;;  %1954 = vmatmul.bf16.gmra.mxu0 %v4127_v51 }
 0x271   : > { %v1969_v20 = vpop.f32.mrf.mxu1 }
 0x274   : > { %2066 = vmatmul.bf16.vlgmr.msrb.gmra.mxu3 %v4038_v61 }
 0x277   : > { %v1871_v23 = vpop.f32.mrf.mxu3  ;;  %v1920_v40 = vpop.f32.mrf.mxu0 }
 0x278   : > { %v1921_v26 = vadd.f32 %v1920_v40, %v4138_v22 }
 0x279   : > { %v1971_v29 = vpop.f32.mrf.mxu1 }
 0x27a   : > { %v1970_v25 = vadd.f32 %v1969_v20, %v1921_v26  ;;  %2017 = vmatmul.bf16.vlgmr.msrb.gmra.mxu2 %v4042_v35 }
 0x27c   : > { %v2108_v30 = vmul.f32 0.5, %v1970_v25 }
 0x27d   : > { %v1822_v0 = vpop.f32.mrf.mxu2 }
 0x27e   : > { %3191 = vtanh.f32 %v2108_v30  ;;  %v1823_v31 = vadd.f32 %v1822_v0, %v4143_v39 }
 0x27f   : > { %v1873_v61 = vpop.f32.mrf.mxu3  ;;  %v1922_v32 = vpop.f32.mrf.mxu0 }
 0x280   : > { %v1872_v33 = vadd.f32 %v1871_v23, %v1823_v31  ;;  %v1923_v58 = vadd.f32 %v1922_v32, %v4138_v22 }
 0x281   : > { %v1974_v34 = vpop.f32.mrf.mxu1 }
 0x282   : > { %v2107_v49 = vmul.f32 0.5, %v1872_v33  ;;  %v1972_v6 = vadd.f32 %v1971_v29, %v1923_v58 }
 0x284   : > { %v3192_v7 = vpop.eup %3191  ;;  %3193 = vtanh.f32 %v2107_v49  ;;  %v2111_v35 = vmul.f32 0.5, %v1972_v6  ;;  %2071 = vmatmul.bf16.gmra.mxu3 %v4050_v36 }
 0x285   : > { %v2204_v44 = vadd.f32 1.0, %v3192_v7  ;;  %v1824_v45 = vpop.f32.mrf.mxu2 }
 0x286   : > { %3195 = vtanh.f32 %v2111_v35  ;;  %v1825_v47 = vadd.f32 %v1824_v45, %v4143_v39 }
 0x287   : > { %v2252_v48 = vmul.f32 0.5, %v2204_v44  ;;  %v1876_v50 = vpop.f32.mrf.mxu3  ;;  %v1925_v52 = vpop.f32.mrf.mxu0 }
 0x288   : > { %v1874_v2 = vadd.f32 %v1873_v61, %v1825_v47  ;;  %v1926_v59 = vadd.f32 %v1925_v52, %v4138_v22 }
 0x289   : > { %2300 = vst [vmem:[%s4152_s12 + $0x8] sm:$0xff] %v2252_v48  ;;  %v1976_v11 = vpop.f32.mrf.mxu1 }
 0x28a   : > { %v3194_v60 = vpop.eup %3193  ;;  %v2110_v36 = vmul.f32 0.5, %v1874_v2  ;;  %v1975_v27 = vadd.f32 %v1974_v34, %v1926_v59  ;;  %2022 = vmatmul.bf16.gmra.mxu2 %v4054_v57 }
 0x28b   : > { %v2203_v42 = vadd.f32 1.0, %v3194_v60 }
 0x28c   : > { %v3196_v62 = vpop.eup %3195  ;;  %3197 = vtanh.f32 %v2110_v36  ;;  %v2114_v63 = vmul.f32 0.5, %v1975_v27 }
 0x28d   : > { %v2251_v9 = vmul.f32 0.5, %v2203_v42  ;;  %v2207_v53 = vadd.f32 1.0, %v3196_v62  ;;  %v1827_v4 = vpop.f32.mrf.mxu2 }
 0x28e   : > { %3199 = vtanh.f32 %v2114_v63  ;;  %v1828_v3 = vadd.f32 %v1827_v4, %v4143_v39 }
 0x28f   : > { %2299 = vst [vmem:[%s4152_s12] sm:$0xff] %v2251_v9  ;;  %v2255_v43 = vmul.f32 0.5, %v2207_v53  ;;  %v1878_v8 = vpop.f32.mrf.mxu3  ;;  %v1927_v5 = vpop.f32.mrf.mxu0 }
 0x290   : > { %v1877_v37 = vadd.f32 %v1876_v50, %v1828_v3  ;;  %v1928_v41 = vadd.f32 %v1927_v5, %v4138_v22 }
 0x291   : > { %2303 = vst [vmem:[%s4152_s12 + $0x20] sm:$0xff] %v2255_v43  ;;  %v1979_v57 = vpop.f32.mrf.mxu1 }
 0x292   : > { %v3198_v12 = vpop.eup %3197  ;;  %v2113_v13 = vmul.f32 0.5, %v1877_v37  ;;  %v1977_v15 = vadd.f32 %v1976_v11, %v1928_v41 }
 0x293   : > { %v2206_v17 = vadd.f32 1.0, %v3198_v12 }
 0x294   : > { %v3200_v28 = vpop.eup %3199  ;;  %3201 = vtanh.f32 %v2113_v13  ;;  %v2117_v18 = vmul.f32 0.5, %v1977_v15  ;;  %2076 = vmatmul.bf16.gmra.mxu3 %v4063_v54 }
 0x295   : > { %v2254_v20 = vmul.f32 0.5, %v2206_v17  ;;  %v2210_v23 = vadd.f32 1.0, %v3200_v28  ;;  %v1829_v40 = vpop.f32.mrf.mxu2 }
 0x296   : > { %3203 = vtanh.f32 %v2117_v18  ;;  %v1830_v26 = vadd.f32 %v1829_v40, %v4143_v39 }
 0x297   : > { %2302 = vst [vmem:[%s4152_s12 + $0x18] sm:$0xff] %v2254_v20  ;;  %v2258_v29 = vmul.f32 0.5, %v2210_v23  ;;  %v1881_v25 = vpop.f32.mrf.mxu3  ;;  %v1930_v30 = vpop.f32.mrf.mxu0 }
 0x298   : > { %v1879_v0 = vadd.f32 %v1878_v8, %v1830_v26  ;;  %v1931_v31 = vadd.f32 %v1930_v30, %v4138_v22 }
 0x299   : > { %2306 = vst [vmem:[%s4152_s12 + $0x38] sm:$0xff] %v2258_v29  ;;  %v1981_v61 = vpop.f32.mrf.mxu1 }
 0x29a   : > { %v3202_v32 = vpop.eup %3201  ;;  %v2116_v33 = vmul.f32 0.5, %v1879_v0  ;;  %v1980_v58 = vadd.f32 %v1979_v57, %v1931_v31  ;;  %2027 = vmatmul.bf16.gmra.mxu2 %v4067_v21 }
 0x29b   : > { %v2209_v54 = vadd.f32 1.0, %v3202_v32 }
 0x29c   : > { %v3204_v34 = vpop.eup %3203  ;;  %3205 = vtanh.f32 %v2116_v33  ;;  %v2120_v49 = vmul.f32 0.5, %v1980_v58 }
 0x29d   : > { %v2257_v6 = vmul.f32 0.5, %v2209_v54  ;;  %v2213_v7 = vadd.f32 1.0, %v3204_v34  ;;  %v1832_v35 = vpop.f32.mrf.mxu2 }
 0x29e   : > { %3207 = vtanh.f32 %v2120_v49  ;;  %v1833_v44 = vadd.f32 %v1832_v35, %v4143_v39 }
 0x29f   : > { %2305 = vst [vmem:[%s4152_s12 + $0x30] sm:$0xff] %v2257_v6  ;;  %v2261_v45 = vmul.f32 0.5, %v2213_v7  ;;  %v1883_v47 = vpop.f32.mrf.mxu3  ;;  %v1932_v48 = vpop.f32.mrf.mxu0 }
 0x2a0   : > { %v1882_v50 = vadd.f32 %v1881_v25, %v1833_v44  ;;  %v1933_v52 = vadd.f32 %v1932_v48, %v4138_v22 }
 0x2a1   : > { %2309 = vst [vmem:[%s4152_s12 + $0x50] sm:$0xff] %v2261_v45  ;;  %v1984_v21 = vpop.f32.mrf.mxu1 }
 0x2a2   : > { %v3206_v2 = vpop.eup %3205  ;;  %v2119_v59 = vmul.f32 0.5, %v1882_v50  ;;  %v1982_v11 = vadd.f32 %v1981_v61, %v1933_v52 }
 0x2a3   : > { %v2212_v60 = vadd.f32 1.0, %v3206_v2 }
 0x2a4   : > { %v3208_v36 = vpop.eup %3207  ;;  %3209 = vtanh.f32 %v2119_v59  ;;  %v2123_v27 = vmul.f32 0.5, %v1982_v11  ;;  %2081 = vmatmul.bf16.gmra.mxu3 %v4075_v19 }
 0x2a5   : > { %v2260_v42 = vmul.f32 0.5, %v2212_v60  ;;  %v2216_v62 = vadd.f32 1.0, %v3208_v36  ;;  %v1834_v63 = vpop.f32.mrf.mxu2 }
 0x2a6   : > { %3211 = vtanh.f32 %v2123_v27  ;;  %v1835_v9 = vadd.f32 %v1834_v63, %v4143_v39 }
 0x2a7   : > { %2308 = vst [vmem:[%s4152_s12 + $0x48] sm:$0xff] %v2260_v42  ;;  %v2264_v53 = vmul.f32 0.5, %v2216_v62  ;;  %v1886_v4 = vpop.f32.mrf.mxu3  ;;  %v1935_v3 = vpop.f32.mrf.mxu0 }
 0x2a8   : > { %v1884_v43 = vadd.f32 %v1883_v47, %v1835_v9  ;;  %v1936_v8 = vadd.f32 %v1935_v3, %v4138_v22 }
 0x2a9   : > { %2312 = vst [vmem:[%s4152_s12 + $0x68] sm:$0xff] %v2264_v53  ;;  %v1986_v5 = vpop.f32.mrf.mxu1 }
 0x2aa   : > { %v3210_v37 = vpop.eup %3209  ;;  %v2122_v41 = vmul.f32 0.5, %v1884_v43  ;;  %v1985_v57 = vadd.f32 %v1984_v21, %v1936_v8  ;;  %2032 = vmatmul.bf16.gmra.mxu2 %v4079_v38 }
 0x2ab   : > { %v2215_v19 = vadd.f32 1.0, %v3210_v37 }
 0x2ac   : > { %v3212_v12 = vpop.eup %3211  ;;  %3213 = vtanh.f32 %v2122_v41  ;;  %v2126_v13 = vmul.f32 0.5, %v1985_v57 }
 0x2ad   : > { %v2263_v15 = vmul.f32 0.5, %v2215_v19  ;;  %v2219_v17 = vadd.f32 1.0, %v3212_v12  ;;  %v1837_v28 = vpop.f32.mrf.mxu2 }
 0x2ae   : > { %3215 = vtanh.f32 %v2126_v13  ;;  %v1838_v18 = vadd.f32 %v1837_v28, %v4143_v39 }
 0x2af   : > { %2311 = vst [vmem:[%s4152_s12 + $0x60] sm:$0xff] %v2263_v15  ;;  %v2267_v20 = vmul.f32 0.5, %v2219_v17  ;;  %v1888_v23 = vpop.f32.mrf.mxu3  ;;  %v1937_v40 = vpop.f32.mrf.mxu0 }
 0x2b0   : > { %v1887_v26 = vadd.f32 %v1886_v4, %v1838_v18  ;;  %v1938_v29 = vadd.f32 %v1937_v40, %v4138_v22 }
 0x2b1   : > { %2315 = vst [vmem:[%s4152_s12 + $0x80] sm:$0xff] %v2267_v20  ;;  %v1989_v38 = vpop.f32.mrf.mxu1 }
 0x2b2   : > { %v3214_v25 = vpop.eup %3213  ;;  %v2125_v30 = vmul.f32 0.5, %v1887_v26  ;;  %v1987_v0 = vadd.f32 %v1986_v5, %v1938_v29 }
 0x2b3   : > { %v2218_v31 = vadd.f32 1.0, %v3214_v25 }
 0x2b4   : > { %v3216_v61 = vpop.eup %3215  ;;  %3217 = vtanh.f32 %v2125_v30  ;;  %v2129_v32 = vmul.f32 0.5, %v1987_v0  ;;  %2086 = vmatmul.bf16.gmra.mxu3 %v4087_v1 }
 0x2b5   : > { %v2266_v33 = vmul.f32 0.5, %v2218_v31  ;;  %v2222_v58 = vadd.f32 1.0, %v3216_v61  ;;  %v1839_v54 = vpop.f32.mrf.mxu2 }
 0x2b6   : > { %3219 = vtanh.f32 %v2129_v32  ;;  %v1840_v34 = vadd.f32 %v1839_v54, %v4143_v39 }
 0x2b7   : > { %2314 = vst [vmem:[%s4152_s12 + $0x78] sm:$0xff] %v2266_v33  ;;  %v2270_v49 = vmul.f32 0.5, %v2222_v58  ;;  %v1891_v6 = vpop.f32.mrf.mxu3  ;;  %v1940_v7 = vpop.f32.mrf.mxu0 }
 0x2b8   : > { %v1889_v35 = vadd.f32 %v1888_v23, %v1840_v34  ;;  %v1941_v44 = vadd.f32 %v1940_v7, %v4138_v22 }
 0x2b9   : > { %2318 = vst [vmem:[%s4152_s12 + $0x98] sm:$0xff] %v2270_v49  ;;  %v1991_v45 = vpop.f32.mrf.mxu1 }
 0x2ba   : > { %v3218_v47 = vpop.eup %3217  ;;  %v2128_v48 = vmul.f32 0.5, %v1889_v35  ;;  %v1990_v50 = vadd.f32 %v1989_v38, %v1941_v44  ;;  %2037 = vmatmul.bf16.gmra.mxu2 %v4091_v16 }
 0x2bb   : > { %v2221_v1 = vadd.f32 1.0, %v3218_v47 }
 0x2bc   : > { %v3220_v52 = vpop.eup %3219  ;;  %3221 = vtanh.f32 %v2128_v48  ;;  %v2132_v21 = vmul.f32 0.5, %v1990_v50 }
 0x2bd   : > { %v2269_v2 = vmul.f32 0.5, %v2221_v1  ;;  %v2225_v59 = vadd.f32 1.0, %v3220_v52  ;;  %v1842_v11 = vpop.f32.mrf.mxu2 }
 0x2be   : > { %3223 = vtanh.f32 %v2132_v21  ;;  %v1843_v60 = vadd.f32 %v1842_v11, %v4143_v39 }
 0x2bf   : > { %2317 = vst [vmem:[%s4152_s12 + $0x90] sm:$0xff] %v2269_v2  ;;  %v2273_v36 = vmul.f32 0.5, %v2225_v59  ;;  %v1893_v27 = vpop.f32.mrf.mxu3  ;;  %v1942_v42 = vpop.f32.mrf.mxu0 }
 0x2c0   : > { %v1892_v62 = vadd.f32 %v1891_v6, %v1843_v60  ;;  %v1943_v63 = vadd.f32 %v1942_v42, %v4138_v22 }
 0x2c1   : > { %2321 = vst [vmem:[%s4152_s12 + $0xb0] sm:$0xff] %v2273_v36  ;;  %v1994_v16 = vpop.f32.mrf.mxu1 }
 0x2c2   : > { %v3222_v9 = vpop.eup %3221  ;;  %v2131_v53 = vmul.f32 0.5, %v1892_v62  ;;  %v1992_v4 = vadd.f32 %v1991_v45, %v1943_v63 }
 0x2c3   : > { %v2224_v3 = vadd.f32 1.0, %v3222_v9 }
 0x2c4   : > { %v3224_v43 = vpop.eup %3223  ;;  %3225 = vtanh.f32 %v2131_v53  ;;  %v2135_v8 = vmul.f32 0.5, %v1992_v4  ;;  %2091 = vmatmul.bf16.gmra.mxu3 %v4099_v56 }
 0x2c5   : > { %v2272_v5 = vmul.f32 0.5, %v2224_v3  ;;  %v2228_v37 = vadd.f32 1.0, %v3224_v43  ;;  %v1844_v41 = vpop.f32.mrf.mxu2 }
 0x2c6   : > { %3227 = vtanh.f32 %v2135_v8  ;;  %v1845_v57 = vadd.f32 %v1844_v41, %v4143_v39 }
 0x2c7   : > { %2320 = vst [vmem:[%s4152_s12 + $0xa8] sm:$0xff] %v2272_v5  ;;  %v2276_v19 = vmul.f32 0.5, %v2228_v37  ;;  %v1896_v12 = vpop.f32.mrf.mxu3  ;;  %v1945_v13 = vpop.f32.mrf.mxu0 }
 0x2c8   : > { %v1894_v15 = vadd.f32 %v1893_v27, %v1845_v57  ;;  %v1946_v17 = vadd.f32 %v1945_v13, %v4138_v22 }
 0x2c9   : > { %2324 = vst [vmem:[%s4152_s12 + $0xc8] sm:$0xff] %v2276_v19  ;;  %v1996_v28 = vpop.f32.mrf.mxu1 }
 0x2ca   : > { %v3226_v18 = vpop.eup %3225  ;;  %v2134_v20 = vmul.f32 0.5, %v1894_v15  ;;  %v1995_v23 = vadd.f32 %v1994_v16, %v1946_v17  ;;  %2042 = vmatmul.bf16.gmra.mxu2 %v4103_v24 }
 0x2cb   : > { %v2227_v56 = vadd.f32 1.0, %v3226_v18 }
 0x2cc   : > { %v3228_v40 = vpop.eup %3227  ;;  %3229 = vtanh.f32 %v2134_v20  ;;  %v2138_v26 = vmul.f32 0.5, %v1995_v23 }
 0x2cd   : > { %v2275_v29 = vmul.f32 0.5, %v2227_v56  ;;  %v2231_v38 = vadd.f32 1.0, %v3228_v40  ;;  %v1847_v25 = vpop.f32.mrf.mxu2 }
 0x2ce   : > { %3231 = vtanh.f32 %v2138_v26  ;;  %v1848_v30 = vadd.f32 %v1847_v25, %v4143_v39 }
 0x2cf   : > { %2323 = vst [vmem:[%s4152_s12 + $0xc0] sm:$0xff] %v2275_v29  ;;  %v2279_v0 = vmul.f32 0.5, %v2231_v38  ;;  %v1898_v31 = vpop.f32.mrf.mxu3  ;;  %v1947_v61 = vpop.f32.mrf.mxu0 }
 0x2d0   : > { %v1897_v32 = vadd.f32 %v1896_v12, %v1848_v30  ;;  %v1948_v33 = vadd.f32 %v1947_v61, %v4138_v22 }
 0x2d1   : > { %2327 = vst [vmem:[%s4152_s12 + $0xe0] sm:$0xff] %v2279_v0  ;;  %v1999_v34 = vpop.f32.mrf.mxu1 }
 0x2d2   : > { %v3230_v24 = vpop.eup %3229  ;;  %v2137_v58 = vmul.f32 0.5, %v1897_v32  ;;  %v1997_v54 = vadd.f32 %v1996_v28, %v1948_v33 }
 0x2d3   : > { %v2230_v49 = vadd.f32 1.0, %v3230_v24 }
 0x2d4   : > { %v3232_v6 = vpop.eup %3231  ;;  %3233 = vtanh.f32 %v2137_v58  ;;  %v2141_v7 = vmul.f32 0.5, %v1997_v54  ;;  %2096 = vmatmul.bf16.gmra.mxu3 %v4111_v10 }
 0x2d5   : > { %v2278_v35 = vmul.f32 0.5, %v2230_v49  ;;  %v2234_v44 = vadd.f32 1.0, %v3232_v6  ;;  %v1849_v45 = vpop.f32.mrf.mxu2 }
 0x2d6   : > { %3235 = vtanh.f32 %v2141_v7  ;;  %v1850_v47 = vadd.f32 %v1849_v45, %v4143_v39 }
 0x2d7   : > { %2326 = vst [vmem:[%s4152_s12 + $0xd8] sm:$0xff] %v2278_v35  ;;  %v2282_v48 = vmul.f32 0.5, %v2234_v44  ;;  %v1901_v50 = vpop.f32.mrf.mxu3  ;;  %v1950_v1 = vpop.f32.mrf.mxu0 }
 0x2d8   : > { %v1899_v52 = vadd.f32 %v1898_v31, %v1850_v47  ;;  %v1951_v21 = vadd.f32 %v1950_v1, %v4138_v22 }
 0x2d9   : > { %2330 = vst [vmem:[%s4152_s12 + $0xf8] sm:$0xff] %v2282_v48  ;;  %v2001_v27 = vpop.f32.mrf.mxu1 }
 0x2da   : > { %v3234_v2 = vpop.eup %3233  ;;  %v2140_v59 = vmul.f32 0.5, %v1899_v52  ;;  %v2000_v11 = vadd.f32 %v1999_v34, %v1951_v21  ;;  %2047 = vmatmul.bf16.gmra.mxu2 %v4115_v55 }
 0x2db   : > { %v2233_v10 = vadd.f32 1.0, %v3234_v2 }
 0x2dc   : > { %v3236_v60 = vpop.eup %3235  ;;  %3237 = vtanh.f32 %v2140_v59  ;;  %v2144_v36 = vmul.f32 0.5, %v2000_v11  ;;  %v4224_v59 = vperm.slane %v4134_v46, 2 }
 0x2dd   : > { %v2281_v42 = vmul.f32 0.5, %v2233_v10  ;;  %v2237_v62 = vadd.f32 1.0, %v3236_v60  ;;  %v1852_v63 = vpop.f32.mrf.mxu2 }
 0x2de   : > { %3239 = vtanh.f32 %v2144_v36  ;;  %v1853_v16 = vadd.f32 %v1852_v63, %v4143_v39 }
 0x2df   : > { %2329 = vst [vmem:[%s4152_s12 + $0xf0] sm:$0xff] %v2281_v42  ;;  %v2285_v9 = vmul.f32 0.5, %v2237_v62  ;;  %v1903_v53 = vpop.f32.mrf.mxu3  ;;  %v1952_v4 = vpop.f32.mrf.mxu0 }
 0x2e0   : > { %v1902_v3 = vadd.f32 %v1901_v50, %v1853_v16  ;;  %v1953_v43 = vadd.f32 %v1952_v4, %v4138_v22 }
 0x2e1   : > { %2333 = vst [vmem:[%s4152_s12 + $0x110] sm:$0xff] %v2285_v9  ;;  %v2004_v15 = vpop.f32.mrf.mxu1 }
 0x2e2   : > { %v3238_v55 = vpop.eup %3237  ;;  %v2143_v8 = vmul.f32 0.5, %v1902_v3  ;;  %v2002_v5 = vadd.f32 %v2001_v27, %v1953_v43 }
 0x2e3   : > { %v2236_v37 = vadd.f32 1.0, %v3238_v55 }
 0x2e4   : > { %v3240_v41 = vpop.eup %3239  ;;  %3241 = vtanh.f32 %v2143_v8  ;;  %v2147_v57 = vmul.f32 0.5, %v2002_v5  ;;  %2101 = vmatmul.bf16.gmra.mxu3 %v4123_v14 }
 0x2e5   : > { %v2284_v19 = vmul.f32 0.5, %v2236_v37  ;;  %v2240_v12 = vadd.f32 1.0, %v3240_v41  ;;  %v1854_v13 = vpop.f32.mrf.mxu2 }
 0x2e6   : > { %3243 = vtanh.f32 %v2147_v57  ;;  %v1855_v17 = vadd.f32 %v1854_v13, %v4143_v39 }
 0x2e7   : > { %2332 = vst [vmem:[%s4152_s12 + $0x108] sm:$0xff] %v2284_v19  ;;  %v2288_v28 = vmul.f32 0.5, %v2240_v12  ;;  %v1906_v18 = vpop.f32.mrf.mxu3  ;;  %v1955_v20 = vpop.f32.mrf.mxu0 }
 0x2e8   : > { %v1904_v23 = vadd.f32 %v1903_v53, %v1855_v17  ;;  %v1956_v56 = vadd.f32 %v1955_v20, %v4138_v22 }
 0x2e9   : > { %2336 = vst [vmem:[%s4152_s12 + $0x128] sm:$0xff] %v2288_v28 }
 0x2ea   : > { %v3242_v40 = vpop.eup %3241  ;;  %v2146_v26 = vmul.f32 0.5, %v1904_v23  ;;  %v2005_v29 = vadd.f32 %v2004_v15, %v1956_v56  ;;  %2052 = vmatmul.bf16.gmra.mxu2 %v4127_v51  ;;  %v2006_v51 = vpop.f32.mrf.mxu1 }
 0x2eb   : > { %v2239_v14 = vadd.f32 1.0, %v3242_v40 }
 0x2ec   : > { %v3244_v38 = vpop.eup %3243  ;;  %3245 = vtanh.f32 %v2146_v26  ;;  %v2150_v25 = vmul.f32 0.5, %v2005_v29 }
 0x2ed   : > { %v2287_v30 = vmul.f32 0.5, %v2239_v14  ;;  %v2243_v0 = vadd.f32 1.0, %v3244_v38  ;;  %v1857_v31 = vpop.f32.mrf.mxu2 }
 0x2ee   : > { %3247 = vtanh.f32 %v2150_v25  ;;  %v1858_v61 = vadd.f32 %v1857_v31, %v4143_v39 }
 0x2ef   : > { %2335 = vst [vmem:[%s4152_s12 + $0x120] sm:$0xff] %v2287_v30  ;;  %v2291_v32 = vmul.f32 0.5, %v2243_v0  ;;  %v1908_v33 = vpop.f32.mrf.mxu3  ;;  %v1957_v24 = vpop.f32.mrf.mxu0 }
 0x2f0   : > { %v1907_v58 = vadd.f32 %v1906_v18, %v1858_v61  ;;  %v1958_v54 = vadd.f32 %v1957_v24, %v4138_v22 }
 0x2f1   : > { %2339 = vst [vmem:[%s4152_s12 + $0x140] sm:$0xff] %v2291_v32 }
 0x2f2   : > { %v3246_v34 = vpop.eup %3245  ;;  %v2149_v49 = vmul.f32 0.5, %v1907_v58  ;;  %v2007_v6 = vadd.f32 %v2006_v51, %v1958_v54 }
 0x2f3   : > { %v2242_v7 = vadd.f32 1.0, %v3246_v34 }
 0x2f4   : > { %v3248_v35 = vpop.eup %3247  ;;  %3249 = vtanh.f32 %v2149_v49  ;;  %v2153_v44 = vmul.f32 0.5, %v2007_v6 }
 0x2f5   : > { %v2290_v45 = vmul.f32 0.5, %v2242_v7  ;;  %v2246_v47 = vadd.f32 1.0, %v3248_v35  ;;  %v1859_v48 = vpop.f32.mrf.mxu2 }
 0x2f6   : > { %3251 = vtanh.f32 %v2153_v44  ;;  %v1860_v50 = vadd.f32 %v1859_v48, %v4143_v39 }
 0x2f7   : > { %2338 = vst [vmem:[%s4152_s12 + $0x138] sm:$0xff] %v2290_v45  ;;  %v2294_v1 = vmul.f32 0.5, %v2246_v47  ;;  %v2067_v22 = vpop.f32.mrf.mxu3 }
 0x2f8   : > { %v1909_v52 = vadd.f32 %v1908_v33, %v1860_v50 }
 0x2f9   : > { %2342 = vst [vmem:[%s4152_s12 + $0x158] sm:$0xff] %v2294_v1 }
 0x2fa   : > { %v3250_v21 = vpop.eup %3249  ;;  %v2152_v2 = vmul.f32 0.5, %v1909_v52 }
 0x2fb   : > { %v2245_v11 = vadd.f32 1.0, %v3250_v21 }
 0x2fc   : > { %v3252_v10 = vpop.eup %3251  ;;  %3253 = vtanh.f32 %v2152_v2 }
 0x2fd   : > { %v2293_v60 = vmul.f32 0.5, %v2245_v11  ;;  %v2249_v36 = vadd.f32 1.0, %v3252_v10  ;;  %v2018_v27 = vpop.f32.mrf.mxu2 }
 0x2fe   : > { %v2019_v39 = vadd.f32 %v2018_v27, %v4224_v59 }
 0x2ff   : > { %2341 = vst [vmem:[%s4152_s12 + $0x150] sm:$0xff] %v2293_v60  ;;  %v2297_v42 = vmul.f32 0.5, %v2249_v36  ;;  %v2069_v62 = vpop.f32.mrf.mxu3 }
 0x300   : > { %v2068_v63 = vadd.f32 %v2067_v22, %v2019_v39 }
 0x301   : > { %2345 = vst [vmem:[%s4152_s12 + $0x170] sm:$0xff] %v2297_v42 }
 0x302   : > { %v3254_v16 = vpop.eup %3253  ;;  %v2109_v9 = vmul.f32 0.5, %v2068_v63 }
 0x303   : > { %v2248_v53 = vadd.f32 1.0, %v3254_v16 }
 0x304   : > { %3255 = vtanh.f32 %v2109_v9 }
 0x305   : > { %v2296_v46 = vmul.f32 0.5, %v2248_v53  ;;  %v2020_v4 = vpop.f32.mrf.mxu2 }
 0x306   : > { %v2021_v3 = vadd.f32 %v2020_v4, %v4224_v59 }
 0x307   : > { %2344 = vst [vmem:[%s4152_s12 + $0x168] sm:$0xff] %v2296_v46  ;;  %v2072_v43 = vpop.f32.mrf.mxu3 }
 0x308   : > { %v2070_v55 = vadd.f32 %v2069_v62, %v2021_v3 }
 0x30a   : > { %v3256_v8 = vpop.eup %3255  ;;  %v2112_v5 = vmul.f32 0.5, %v2070_v55 }
 0x30b   : > { %v2205_v37 = vadd.f32 1.0, %v3256_v8 }
 0x30c   : > { %3257 = vtanh.f32 %v2112_v5 }
 0x30d   : > { %v2253_v41 = vmul.f32 0.5, %v2205_v37  ;;  %v2023_v57 = vpop.f32.mrf.mxu2 }
 0x30e   : > { %v2024_v19 = vadd.f32 %v2023_v57, %v4224_v59 }
 0x30f   : > { %2301 = vst [vmem:[%s4152_s12 + $0x10] sm:$0xff] %v2253_v41  ;;  %v2074_v12 = vpop.f32.mrf.mxu3 }
 0x310   : > { %v2073_v13 = vadd.f32 %v2072_v43, %v2024_v19 }
 0x312   : > { %v3258_v15 = vpop.eup %3257  ;;  %v2115_v17 = vmul.f32 0.5, %v2073_v13 }
 0x313   : > { %v2208_v28 = vadd.f32 1.0, %v3258_v15 }
 0x314   : > { %3259 = vtanh.f32 %v2115_v17 }
 0x315   : > { %v2256_v18 = vmul.f32 0.5, %v2208_v28  ;;  %v2025_v20 = vpop.f32.mrf.mxu2 }
 0x316   : > { %v2026_v23 = vadd.f32 %v2025_v20, %v4224_v59 }
 0x317   : > { %2304 = vst [vmem:[%s4152_s12 + $0x28] sm:$0xff] %v2256_v18  ;;  %v2077_v56 = vpop.f32.mrf.mxu3 }
 0x318   : > { %v2075_v40 = vadd.f32 %v2074_v12, %v2026_v23 }
 0x31a   : > { %v3260_v26 = vpop.eup %3259  ;;  %v2118_v29 = vmul.f32 0.5, %v2075_v40 }
 0x31b   : > { %v2211_v14 = vadd.f32 1.0, %v3260_v26 }
 0x31c   : > { %3261 = vtanh.f32 %v2118_v29 }
 0x31d   : > { %v2259_v38 = vmul.f32 0.5, %v2211_v14  ;;  %v2028_v25 = vpop.f32.mrf.mxu2 }
 0x31e   : > { %v2029_v30 = vadd.f32 %v2028_v25, %v4224_v59 }
 0x31f   : > { %2307 = vst [vmem:[%s4152_s12 + $0x40] sm:$0xff] %v2259_v38  ;;  %v2079_v0 = vpop.f32.mrf.mxu3 }
 0x320   : > { %v2078_v31 = vadd.f32 %v2077_v56, %v2029_v30 }
 0x322   : > { %v3262_v61 = vpop.eup %3261  ;;  %v2121_v32 = vmul.f32 0.5, %v2078_v31 }
 0x323   : > { %v2214_v33 = vadd.f32 1.0, %v3262_v61 }
 0x324   : > { %3263 = vtanh.f32 %v2121_v32 }
 0x325   : > { %v2262_v24 = vmul.f32 0.5, %v2214_v33  ;;  %v2030_v58 = vpop.f32.mrf.mxu2 }
 0x326   : > { %v2031_v54 = vadd.f32 %v2030_v58, %v4224_v59 }
 0x327   : > { %2310 = vst [vmem:[%s4152_s12 + $0x58] sm:$0xff] %v2262_v24  ;;  %v2082_v51 = vpop.f32.mrf.mxu3 }
 0x328   : > { %v2080_v34 = vadd.f32 %v2079_v0, %v2031_v54 }
 0x32a   : > { %v3264_v49 = vpop.eup %3263  ;;  %v2124_v6 = vmul.f32 0.5, %v2080_v34 }
 0x32b   : > { %v2217_v7 = vadd.f32 1.0, %v3264_v49 }
 0x32c   : > { %3265 = vtanh.f32 %v2124_v6 }
 0x32d   : > { %v2265_v35 = vmul.f32 0.5, %v2217_v7  ;;  %v2033_v44 = vpop.f32.mrf.mxu2 }
 0x32e   : > { %v2034_v45 = vadd.f32 %v2033_v44, %v4224_v59 }
 0x32f   : > { %2313 = vst [vmem:[%s4152_s12 + $0x70] sm:$0xff] %v2265_v35  ;;  %v2084_v47 = vpop.f32.mrf.mxu3 }
 0x330   : > { %v2083_v48 = vadd.f32 %v2082_v51, %v2034_v45 }
 0x332   : > { %v3266_v50 = vpop.eup %3265  ;;  %v2127_v1 = vmul.f32 0.5, %v2083_v48 }
 0x333   : > { %v2220_v22 = vadd.f32 1.0, %v3266_v50 }
 0x334   : > { %3267 = vtanh.f32 %v2127_v1 }
 0x335   : > { %v2268_v52 = vmul.f32 0.5, %v2220_v22  ;;  %v2035_v21 = vpop.f32.mrf.mxu2 }
 0x336   : > { %v2036_v2 = vadd.f32 %v2035_v21, %v4224_v59 }
 0x337   : > { %2316 = vst [vmem:[%s4152_s12 + $0x88] sm:$0xff] %v2268_v52  ;;  %v2087_v11 = vpop.f32.mrf.mxu3 }
 0x338   : > { %v2085_v10 = vadd.f32 %v2084_v47, %v2036_v2 }
 0x33a   : > { %v3268_v60 = vpop.eup %3267  ;;  %v2130_v36 = vmul.f32 0.5, %v2085_v10 }
 0x33b   : > { %v2223_v27 = vadd.f32 1.0, %v3268_v60 }
 0x33c   : > { %3269 = vtanh.f32 %v2130_v36 }
 0x33d   : > { %v2271_v39 = vmul.f32 0.5, %v2223_v27  ;;  %v2038_v42 = vpop.f32.mrf.mxu2 }
 0x33e   : > { %v2039_v62 = vadd.f32 %v2038_v42, %v4224_v59 }
 0x33f   : > { %2319 = vst [vmem:[%s4152_s12 + $0xa0] sm:$0xff] %v2271_v39  ;;  %v2089_v63 = vpop.f32.mrf.mxu3 }
 0x340   : > { %v2088_v16 = vadd.f32 %v2087_v11, %v2039_v62 }
 0x342   : > { %v3270_v9 = vpop.eup %3269  ;;  %v2133_v53 = vmul.f32 0.5, %v2088_v16 }
 0x343   : > { %v2226_v46 = vadd.f32 1.0, %v3270_v9 }
 0x344   : > { %3271 = vtanh.f32 %v2133_v53 }
 0x345   : > { %v2274_v4 = vmul.f32 0.5, %v2226_v46  ;;  %v2040_v3 = vpop.f32.mrf.mxu2 }
 0x346   : > { %v2041_v43 = vadd.f32 %v2040_v3, %v4224_v59 }
 0x347   : > { %2322 = vst [vmem:[%s4152_s12 + $0xb8] sm:$0xff] %v2274_v4  ;;  %v2092_v55 = vpop.f32.mrf.mxu3 }
 0x348   : > { %v2090_v8 = vadd.f32 %v2089_v63, %v2041_v43 }
 0x34a   : > { %v3272_v5 = vpop.eup %3271  ;;  %v2136_v37 = vmul.f32 0.5, %v2090_v8 }
 0x34b   : > { %v2229_v41 = vadd.f32 1.0, %v3272_v5 }
 0x34c   : > { %3273 = vtanh.f32 %v2136_v37 }
 0x34d   : > { %v2277_v57 = vmul.f32 0.5, %v2229_v41  ;;  %v2043_v19 = vpop.f32.mrf.mxu2 }
 0x34e   : > { %v2044_v12 = vadd.f32 %v2043_v19, %v4224_v59 }
 0x34f   : > { %2325 = vst [vmem:[%s4152_s12 + $0xd0] sm:$0xff] %v2277_v57  ;;  %v2094_v13 = vpop.f32.mrf.mxu3 }
 0x350   : > { %v2093_v15 = vadd.f32 %v2092_v55, %v2044_v12 }
 0x352   : > { %v3274_v17 = vpop.eup %3273  ;;  %v2139_v28 = vmul.f32 0.5, %v2093_v15 }
 0x353   : > { %v2232_v18 = vadd.f32 1.0, %v3274_v17 }
 0x354   : > { %3275 = vtanh.f32 %v2139_v28 }
 0x355   : > { %v2280_v20 = vmul.f32 0.5, %v2232_v18  ;;  %v2045_v23 = vpop.f32.mrf.mxu2 }
 0x356   : > { %v2046_v56 = vadd.f32 %v2045_v23, %v4224_v59 }
 0x357   : > { %2328 = vst [vmem:[%s4152_s12 + $0xe8] sm:$0xff] %v2280_v20  ;;  %v2097_v26 = vpop.f32.mrf.mxu3 }
 0x358   : > { %v2095_v40 = vadd.f32 %v2094_v13, %v2046_v56 }
 0x35a   : > { %v3276_v29 = vpop.eup %3275  ;;  %v2142_v14 = vmul.f32 0.5, %v2095_v40 }
 0x35b   : > { %v2235_v38 = vadd.f32 1.0, %v3276_v29 }
 0x35c   : > { %3277 = vtanh.f32 %v2142_v14 }
 0x35d   : > { %v2283_v25 = vmul.f32 0.5, %v2235_v38  ;;  %v2048_v30 = vpop.f32.mrf.mxu2 }
 0x35e   : > { %v2049_v0 = vadd.f32 %v2048_v30, %v4224_v59 }
 0x35f   : > { %2331 = vst [vmem:[%s4152_s12 + $0x100] sm:$0xff] %v2283_v25  ;;  %v2099_v24 = vpop.f32.mrf.mxu3 }
 0x360   : > { %v2098_v31 = vadd.f32 %v2097_v26, %v2049_v0 }
 0x362   : > { %v3278_v61 = vpop.eup %3277  ;;  %v2145_v32 = vmul.f32 0.5, %v2098_v31 }
 0x363   : > { %v2238_v33 = vadd.f32 1.0, %v3278_v61 }
 0x364   : > { %3279 = vtanh.f32 %v2145_v32 }
 0x365   : > { %v2286_v58 = vmul.f32 0.5, %v2238_v33  ;;  %v2050_v54 = vpop.f32.mrf.mxu2 }
 0x366   : > { %v2051_v51 = vadd.f32 %v2050_v54, %v4224_v59 }
 0x367   : > { %2334 = vst [vmem:[%s4152_s12 + $0x118] sm:$0xff] %v2286_v58  ;;  %v2102_v44 = vpop.f32.mrf.mxu3 }
 0x368   : > { %v2100_v34 = vadd.f32 %v2099_v24, %v2051_v51 }
 0x36a   : > { %v3280_v49 = vpop.eup %3279  ;;  %v2148_v6 = vmul.f32 0.5, %v2100_v34 }
 0x36b   : > { %v2241_v7 = vadd.f32 1.0, %v3280_v49 }
 0x36c   : > { %3281 = vtanh.f32 %v2148_v6 }
 0x36d   : > { %v2289_v35 = vmul.f32 0.5, %v2241_v7  ;;  %v2053_v45 = vpop.f32.mrf.mxu2 }
 0x36e   : > { %v2054_v47 = vadd.f32 %v2053_v45, %v4224_v59 }
 0x36f   : > { %2337 = vst [vmem:[%s4152_s12 + $0x130] sm:$0xff] %v2289_v35  ;;  %v2104_v11 = vpop.f32.mrf.mxu3 }
 0x370   : > { %v2103_v48 = vadd.f32 %v2102_v44, %v2054_v47 }
 0x372   : > { %v3282_v50 = vpop.eup %3281  ;;  %v2151_v1 = vmul.f32 0.5, %v2103_v48 }
 0x373   : > { %v2244_v22 = vadd.f32 1.0, %v3282_v50 }
 0x374   : > { %3283 = vtanh.f32 %v2151_v1 }
 0x375   : > { %v2292_v52 = vmul.f32 0.5, %v2244_v22  ;;  %v2055_v21 = vpop.f32.mrf.mxu2 }
 0x376   : > { %v2056_v2 = vadd.f32 %v2055_v21, %v4224_v59 }
 0x377   : > { %2340 = vst [vmem:[%s4152_s12 + $0x148] sm:$0xff] %v2292_v52 }
 0x378   : > { %v2105_v10 = vadd.f32 %v2104_v11, %v2056_v2 }
 0x37a   : > { %v3284_v60 = vpop.eup %3283  ;;  %v2154_v36 = vmul.f32 0.5, %v2105_v10 }
 0x37b   : > { %v2247_v27 = vadd.f32 1.0, %v3284_v60 }
 0x37c   : > { %3285 = vtanh.f32 %v2154_v36 }
 0x37d   : > { %v2295_v39 = vmul.f32 0.5, %v2247_v27 }
 0x37f   : > { %2343 = vst [vmem:[%s4152_s12 + $0x160] sm:$0xff] %v2295_v39 }
 0x382   : > { %v3286_v59 = vpop.eup %3285 }
 0x383   : > { %v2250_v42 = vadd.f32 1.0, %v3286_v59 }
 0x385   : > { %v2298_v62 = vmul.f32 0.5, %v2250_v42 }
 0x387   : > { %2346 = vst [vmem:[%s4152_s12 + $0x178] sm:$0xff] %v2298_v62 }
 0x388   : > { %3404 = shalt.err (!%p3401_p10)
}
 0x389   : > { %s3457_s5 = smov 384   ;;  %s3458_s1 = smov 24  }
 0x38a   : > { %3126 = dma.vmem_to_hbm [thread:$0]  (%p3568_p5), %s2362_s22, 6144, %s2364_s23, %s2348_s9, %s3457_s5, %s3457_s5, %s3458_s1  }
 0x38b PF: > { %s2378_s30 = sand.u32 1, %s3435_s24   ;;  %p4313_p12 = scmp.ge.s32.totalorder %s3447_s27, 2 }
 0x38c   : > { %s2379_s12 = scalar_lea.sflag [#allocation4], %s2378_s30 }
 0x38d   : > { %p3140_p13 = pnand %p4313_p12, %p3534_p6 }
 0x38f   : > { %p3141_p0 = pneg %p3140_p13 }
 0x391   : > { %3430 = dma.done.wait (%p3141_p0), %s2379_s12, 6144  }
 0x392   : > { %3432 = vsyncadd (%p3141_p0), %s2379_s12, 4294961152  ;;  %s4314_s13 = sld [smem:[#allocation12_spill]]  ;;  %p21_p3 = scmp.ge.s32.totalorder %s3555_s29, 4  }
 0x393   : > { %s4315_s24 = smov %s3439_s25  ;;  %s4316_s25 = smov %s3443_s26 }
 0x394   : > { %s4318_s27 = smov %s3555_s29  ;;  %23 = sbr.rel (!%p21_p3) target bundleno = 9 (0x9), region = 101 }
 0x398   : > { %s4317_s26 = smov %s4314_s13 }
 0x399   :  { %2385 = vsyncpa [#allocation3], 1 }
 0x39a   :  { %2387 = vsyncpa [#allocation3 + $0x1], 1 }
 0x39b   :  { %2388 = vsyncpa [#allocation6], 1 }
 0x39c   :  { %2389 = vsyncpa [#allocation4], 1 }
 0x39d   :  { %2391 = vsyncpa [#allocation4 + $0x1], 1 }

</bundles_post_ra>
